<compile_context>
chip_gen: v5e
topology: v5e:2x2
jax: 0.10.0
libtpu: 0.0.40
codegen_flags: <defaults>
</compile_context>

<pallas_src>
import functools
import math

import jax
import jax.numpy as jnp
from jax.experimental import pallas as pl
from jax.experimental.pallas import tpu as pltpu


def _round_up(a, b):
    return (a + b - 1) // b * b


def _ffn_kernel(x_ref, gamma_ref, beta_ref, w1_ref, b1_ref, w2_ref, b2_ref,
                o_ref, *, eps):
    # One (row_tile, D) tile of the flattened input; all weights resident in VMEM.
    x = x_ref[...].astype(jnp.float32)

    # --- LayerNorm over the feature axis (f32 statistics, eps=1e-5) ---
    mean = jnp.mean(x, axis=-1, keepdims=True)
    centered = x - mean
    var = jnp.mean(centered * centered, axis=-1, keepdims=True)
    xn = centered * jax.lax.rsqrt(var + eps)
    xn = xn * gamma_ref[...] + beta_ref[...]

    # --- Linear(dim -> hidden): bf16 inputs, f32 accumulation on the MXU ---
    h = jnp.dot(xn.astype(jnp.bfloat16), w1_ref[...],
                preferred_element_type=jnp.float32) + b1_ref[...]

    # --- GELU (exact, erf-based, matching torch.nn.GELU default) ---
    h = 0.5 * h * (1.0 + jax.lax.erf(h * (1.0 / math.sqrt(2.0))))

    # Dropout(p=0.0) is the identity -> no-op.

    # --- Linear(hidden -> dim): bf16 inputs, f32 accumulation ---
    out = jnp.dot(h.astype(jnp.bfloat16), w2_ref[...],
                  preferred_element_type=jnp.float32) + b2_ref[...]

    o_ref[...] = out.astype(o_ref.dtype)


def feed_forward(x, params, *, row_tile=256, eps=1e-5,
                 vmem_limit_bytes=48 * 1024 * 1024):
    """x: (batch, seq, dim) float32. Returns same shape/dtype."""
    gamma, beta, w1, b1, w2, b2 = params
    B, N, D = x.shape
    H = w1.shape[1]
    M = B * N

    # Effective row tile: target `row_tile`, never exceed the (sublane-rounded)
    # row count; pad rows so the grid divides evenly. Zero-padded rows are
    # harmless through LayerNorm (centered term is exactly 0) and get sliced off.
    rt = min(row_tile, _round_up(M, 8))
    m_pad = _round_up(M, rt)

    x2d = x.reshape(M, D)
    if m_pad != M:
        x2d = jnp.pad(x2d, ((0, m_pad - M), (0, 0)))

    # Affine params / biases kept 2D (1, features) for TPU layout (f32).
    # Weights cast to bf16: halves resident VMEM + HBM traffic, MXU-native.
    gamma2 = gamma.reshape(1, D).astype(jnp.float32)
    beta2 = beta.reshape(1, D).astype(jnp.float32)
    b1_2 = b1.reshape(1, H).astype(jnp.float32)
    b2_2 = b2.reshape(1, D).astype(jnp.float32)
    w1_bf = w1.astype(jnp.bfloat16)
    w2_bf = w2.astype(jnp.bfloat16)

    kernel = functools.partial(_ffn_kernel, eps=eps)
    grid = (m_pad // rt,)

    def run(single_buffer_weights):
        def const_spec(shape):
            if single_buffer_weights:
                # Grid-invariant operands: no need to double-buffer them.
                return pl.BlockSpec(shape, lambda i: (0, 0),
                                    pipeline_mode=pl.Buffered(1))
            return pl.BlockSpec(shape, lambda i: (0, 0))

        return pl.pallas_call(
            kernel,
            out_shape=jax.ShapeDtypeStruct((m_pad, D), x.dtype),
            grid_spec=pltpu.PrefetchScalarGridSpec(
                num_scalar_prefetch=0,
                grid=grid,
                in_specs=[
                    pl.BlockSpec((rt, D), lambda i: (i, 0)),  # x rows (pipelined)
                    const_spec((1, D)),    # ln gamma
                    const_spec((1, D)),    # ln beta
                    const_spec((D, H)),    # w1 (bf16, resident)
                    const_spec((1, H)),    # b1
                    const_spec((H, D)),    # w2 (bf16, resident)
                    const_spec((1, D)),    # b2
                ],
                out_specs=pl.BlockSpec((rt, D), lambda i: (i, 0)),
            ),
            compiler_params=pltpu.CompilerParams(
                dimension_semantics=("parallel",),
                vmem_limit_bytes=vmem_limit_bytes),
        )(x2d, gamma2, beta2, w1_bf, b1_2, w2_bf, b2_2)

    try:
        out2d = run(single_buffer_weights=True)
    except Exception:
        # Fallback if this JAX build rejects pipeline_mode=pl.Buffered(1).
        out2d = run(single_buffer_weights=False)

    if m_pad != M:
        out2d = out2d[:M]
    return out2d.reshape(B, N, D)


def init_params(key, dim, hidden_dim):
    """Deterministic init matching the module's parameter shapes."""
    k1, k2, k3, k4 = jax.random.split(key, 4)
    # LayerNorm: weight=1, bias=0 (PyTorch default).
    gamma = jnp.ones((dim,), jnp.float32)
    beta = jnp.zeros((dim,), jnp.float32)
    # Linear layers: uniform(-1/sqrt(fan_in), 1/sqrt(fan_in)) like PyTorch.
    lim1 = 1.0 / math.sqrt(dim)
    w1 = jax.random.uniform(k1, (dim, hidden_dim), jnp.float32, -lim1, lim1)
    b1 = jax.random.uniform(k2, (hidden_dim,), jnp.float32, -lim1, lim1)
    lim2 = 1.0 / math.sqrt(hidden_dim)
    w2 = jax.random.uniform(k3, (hidden_dim, dim), jnp.float32, -lim2, lim2)
    b2 = jax.random.uniform(k4, (dim,), jnp.float32, -lim2, lim2)
    return gamma, beta, w1, b1, w2, b2


def feed_forward_ref(x, params, eps=1e-5):
    # Pure f32 reference (LayerNorm -> Linear -> exact GELU -> Linear).
    gamma, beta, w1, b1, w2, b2 = params
    mean = jnp.mean(x, axis=-1, keepdims=True)
    var = jnp.mean((x - mean) ** 2, axis=-1, keepdims=True)
    xn = (x - mean) / jnp.sqrt(var + eps) * gamma + beta
    h = xn @ w1 + b1
    h = 0.5 * h * (1.0 + jax.lax.erf(h / math.sqrt(2.0)))
    return h @ w2 + b2


if __name__ == "__main__":
    key = jax.random.PRNGKey(0)
    kx, kp = jax.random.split(key)

    # Small but lane-dense shapes (dim / hidden multiples of 128).
    batch, seq, dim, hidden = 2, 16, 128, 256
    x = jax.random.normal(kx, (batch, seq, dim), jnp.float32)
    params = init_params(kp, dim, hidden)

    out = feed_forward(x, params)
    out = jax.block_until_ready(out)

    ref = feed_forward_ref(x, params)
    assert out.shape == (batch, seq, dim)
    # bf16 matmul inputs vs f32 reference -> loosened tolerance.
    assert jnp.allclose(out, ref, atol=5e-2, rtol=5e-2), (
        float(jnp.max(jnp.abs(out - ref))))

    print("KERNEL_OK")
</pallas_src>

<mosaic_0001>
module attributes {stable_mosaic.version = 11 : i64} {
  func.func @_ffn_kernel(%arg0: i32, %arg1: memref<32x128xf32, #tpu.memory_space<vmem>>, %arg2: memref<1x128xf32, #tpu.memory_space<vmem>>, %arg3: memref<1x128xf32, #tpu.memory_space<vmem>>, %arg4: memref<128x256xbf16, #tpu.memory_space<vmem>>, %arg5: memref<1x256xf32, #tpu.memory_space<vmem>>, %arg6: memref<256x128xbf16, #tpu.memory_space<vmem>>, %arg7: memref<1x128xf32, #tpu.memory_space<vmem>>, %arg8: memref<32x128xf32, #tpu.memory_space<vmem>>) attributes {dimension_semantics = [#tpu.dimension_semantics<parallel>], iteration_bounds = array<i64: 1>, scalar_prefetch = 0 : i64, scratch_operands = 0 : i64, tpu.core_type = #tpu.core_type<tc>, window_params = [{transform_indices = @transform_0, window_bounds = array<i64: 32, 128>}, {pipeline_mode = #tpu.pipeline_mode<synchronous>, transform_indices = @transform_1, window_bounds = array<i64: 1, 128>}, {pipeline_mode = #tpu.pipeline_mode<synchronous>, transform_indices = @transform_2, window_bounds = array<i64: 1, 128>}, {pipeline_mode = #tpu.pipeline_mode<synchronous>, transform_indices = @transform_3, window_bounds = array<i64: 128, 256>}, {pipeline_mode = #tpu.pipeline_mode<synchronous>, transform_indices = @transform_4, window_bounds = array<i64: 1, 256>}, {pipeline_mode = #tpu.pipeline_mode<synchronous>, transform_indices = @transform_5, window_bounds = array<i64: 256, 128>}, {pipeline_mode = #tpu.pipeline_mode<synchronous>, transform_indices = @transform_6, window_bounds = array<i64: 1, 128>}, {transform_indices = @transform_7, window_bounds = array<i64: 32, 128>}]} {
    %c0 = arith.constant 0 : index
    %c0_0 = arith.constant 0 : index
    %0 = vector.load %arg1[%c0, %c0_0] : memref<32x128xf32, #tpu.memory_space<vmem>>, vector<32x128xf32>
    %cst = arith.constant dense<0.000000e+00> : vector<32xf32>
    %1 = vector.multi_reduction <add>, %0, %cst [1] : vector<32x128xf32> to vector<32xf32>
    %2 = vector.shape_cast %1 : vector<32xf32> to vector<32x1xf32>
    %cst_1 = arith.constant 1.280000e+02 : f32
    %3 = vector.broadcast %cst_1 : f32 to vector<32x1xf32>
    %4 = arith.divf %2, %3 : vector<32x1xf32>
    %5 = vector.broadcast %4 : vector<32x1xf32> to vector<32x128xf32>
    %6 = arith.subf %0, %5 : vector<32x128xf32>
    %7 = arith.mulf %6, %6 : vector<32x128xf32>
    %cst_2 = arith.constant dense<0.000000e+00> : vector<32xf32>
    %8 = vector.multi_reduction <add>, %7, %cst_2 [1] : vector<32x128xf32> to vector<32xf32>
    %9 = vector.shape_cast %8 : vector<32xf32> to vector<32x1xf32>
    %cst_3 = arith.constant 1.280000e+02 : f32
    %10 = vector.broadcast %cst_3 : f32 to vector<32x1xf32>
    %11 = arith.divf %9, %10 : vector<32x1xf32>
    %cst_4 = arith.constant 9.99999974E-6 : f32
    %12 = vector.broadcast %cst_4 : f32 to vector<32x1xf32>
    %13 = arith.addf %11, %12 : vector<32x1xf32>
    %14 = math.rsqrt %13 : vector<32x1xf32>
    %15 = vector.broadcast %14 : vector<32x1xf32> to vector<32x128xf32>
    %16 = arith.mulf %6, %15 : vector<32x128xf32>
    %c0_5 = arith.constant 0 : index
    %c0_6 = arith.constant 0 : index
    %17 = vector.load %arg2[%c0_5, %c0_6] : memref<1x128xf32, #tpu.memory_space<vmem>>, vector<1x128xf32>
    %18 = vector.broadcast %17 : vector<1x128xf32> to vector<32x128xf32>
    %19 = arith.mulf %16, %18 : vector<32x128xf32>
    %c0_7 = arith.constant 0 : index
    %c0_8 = arith.constant 0 : index
    %20 = vector.load %arg3[%c0_7, %c0_8] : memref<1x128xf32, #tpu.memory_space<vmem>>, vector<1x128xf32>
    %21 = vector.broadcast %20 : vector<1x128xf32> to vector<32x128xf32>
    %22 = arith.addf %19, %21 : vector<32x128xf32>
    %23 = arith.truncf %22 : vector<32x128xf32> to vector<32x128xbf16>
    %c0_9 = arith.constant 0 : index
    %c0_10 = arith.constant 0 : index
    %24 = vector.load %arg4[%c0_9, %c0_10] : memref<128x256xbf16, #tpu.memory_space<vmem>>, vector<128x256xbf16>
    %cst_11 = arith.constant dense<0.000000e+00> : vector<32x256xf32>
    %25 = tpu.matmul %23, %24, %cst_11 {dimension_numbers = #tpu.dot_dimension_numbers<[1], [0], [0], [1], [0, 0, 1, 1], [], []>} : vector<32x128xbf16>, vector<128x256xbf16>, vector<32x256xf32> -> vector<32x256xf32>
    %c0_12 = arith.constant 0 : index
    %c0_13 = arith.constant 0 : index
    %26 = vector.load %arg5[%c0_12, %c0_13] : memref<1x256xf32, #tpu.memory_space<vmem>>, vector<1x256xf32>
    %27 = vector.broadcast %26 : vector<1x256xf32> to vector<32x256xf32>
    %28 = arith.addf %25, %27 : vector<32x256xf32>
    %cst_14 = arith.constant 5.000000e-01 : f32
    %29 = vector.broadcast %cst_14 : f32 to vector<32x256xf32>
    %30 = arith.mulf %29, %28 : vector<32x256xf32>
    %cst_15 = arith.constant 0.707106769 : f32
    %31 = vector.broadcast %cst_15 : f32 to vector<32x256xf32>
    %32 = arith.mulf %28, %31 : vector<32x256xf32>
    %33 = math.erf %32 : vector<32x256xf32>
    %cst_16 = arith.constant 1.000000e+00 : f32
    %34 = vector.broadcast %cst_16 : f32 to vector<32x256xf32>
    %35 = arith.addf %34, %33 : vector<32x256xf32>
    %36 = arith.mulf %30, %35 : vector<32x256xf32>
    %37 = arith.truncf %36 : vector<32x256xf32> to vector<32x256xbf16>
    %c0_17 = arith.constant 0 : index
    %c0_18 = arith.constant 0 : index
    %38 = vector.load %arg6[%c0_17, %c0_18] : memref<256x128xbf16, #tpu.memory_space<vmem>>, vector<256x128xbf16>
    %cst_19 = arith.constant dense<0.000000e+00> : vector<32x128xf32>
    %39 = tpu.matmul %37, %38, %cst_19 {dimension_numbers = #tpu.dot_dimension_numbers<[1], [0], [0], [1], [0, 0, 1, 1], [], []>} : vector<32x256xbf16>, vector<256x128xbf16>, vector<32x128xf32> -> vector<32x128xf32>
    %c0_20 = arith.constant 0 : index
    %c0_21 = arith.constant 0 : index
    %40 = vector.load %arg7[%c0_20, %c0_21] : memref<1x128xf32, #tpu.memory_space<vmem>>, vector<1x128xf32>
    %41 = vector.broadcast %40 : vector<1x128xf32> to vector<32x128xf32>
    %42 = arith.addf %39, %41 : vector<32x128xf32>
    %c0_22 = arith.constant 0 : index
    %c0_23 = arith.constant 0 : index
    %43 = vector.load %arg8[%c0_22, %c0_23] : memref<32x128xf32, #tpu.memory_space<vmem>>, vector<32x128xf32>
    tpu.vector_store %arg8[%c0_22, %c0_23], %42 {strides = array<i32>} : memref<32x128xf32, #tpu.memory_space<vmem>>, vector<32x128xf32>,
    return
  }
  func.func @transform_0(%arg0: i32) -> (i32, i32) {
    %c0_i32 = arith.constant 0 : i32
    %c0_i32_0 = arith.constant 0 : i32
    return %arg0, %c0_i32 : i32, i32
  }
  func.func @transform_1(%arg0: i32) -> (i32, i32) {
    %c0_i32 = arith.constant 0 : i32
    %c0_i32_0 = arith.constant 0 : i32
    %c0_i32_1 = arith.constant 0 : i32
    return %c0_i32, %c0_i32_0 : i32, i32
  }
  func.func @transform_2(%arg0: i32) -> (i32, i32) {
    %c0_i32 = arith.constant 0 : i32
    %c0_i32_0 = arith.constant 0 : i32
    %c0_i32_1 = arith.constant 0 : i32
    return %c0_i32, %c0_i32_0 : i32, i32
  }
  func.func @transform_3(%arg0: i32) -> (i32, i32) {
    %c0_i32 = arith.constant 0 : i32
    %c0_i32_0 = arith.constant 0 : i32
    %c0_i32_1 = arith.constant 0 : i32
    return %c0_i32, %c0_i32_0 : i32, i32
  }
  func.func @transform_4(%arg0: i32) -> (i32, i32) {
    %c0_i32 = arith.constant 0 : i32
    %c0_i32_0 = arith.constant 0 : i32
    %c0_i32_1 = arith.constant 0 : i32
    return %c0_i32, %c0_i32_0 : i32, i32
  }
  func.func @transform_5(%arg0: i32) -> (i32, i32) {
    %c0_i32 = arith.constant 0 : i32
    %c0_i32_0 = arith.constant 0 : i32
    %c0_i32_1 = arith.constant 0 : i32
    return %c0_i32, %c0_i32_0 : i32, i32
  }
  func.func @transform_6(%arg0: i32) -> (i32, i32) {
    %c0_i32 = arith.constant 0 : i32
    %c0_i32_0 = arith.constant 0 : i32
    %c0_i32_1 = arith.constant 0 : i32
    return %c0_i32, %c0_i32_0 : i32, i32
  }
  func.func @transform_7(%arg0: i32) -> (i32, i32) {
    %c0_i32 = arith.constant 0 : i32
    %c0_i32_0 = arith.constant 0 : i32
    return %arg0, %c0_i32 : i32, i32
  }
}

module attributes {stable_mosaic.version = 11 : i64} {
  func.func @_ffn_kernel(%arg0: i32, %arg1: memref<32x128xf32, #tpu.memory_space<vmem>>, %arg2: memref<1x128xf32, #tpu.memory_space<vmem>>, %arg3: memref<1x128xf32, #tpu.memory_space<vmem>>, %arg4: memref<128x256xbf16, #tpu.memory_space<vmem>>, %arg5: memref<1x256xf32, #tpu.memory_space<vmem>>, %arg6: memref<256x128xbf16, #tpu.memory_space<vmem>>, %arg7: memref<1x128xf32, #tpu.memory_space<vmem>>, %arg8: memref<32x128xf32, #tpu.memory_space<vmem>>) attributes {dimension_semantics = [#tpu.dimension_semantics<parallel>], iteration_bounds = array<i64: 1>, scalar_prefetch = 0 : i64, scratch_operands = 0 : i64, tpu.core_type = #tpu.core_type<tc>, window_params = [{transform_indices = @transform_0, window_bounds = array<i64: 32, 128>}, {pipeline_mode = #tpu.pipeline_mode<synchronous>, transform_indices = @transform_1, window_bounds = array<i64: 1, 128>}, {pipeline_mode = #tpu.pipeline_mode<synchronous>, transform_indices = @transform_2, window_bounds = array<i64: 1, 128>}, {pipeline_mode = #tpu.pipeline_mode<synchronous>, transform_indices = @transform_3, window_bounds = array<i64: 128, 256>}, {pipeline_mode = #tpu.pipeline_mode<synchronous>, transform_indices = @transform_4, window_bounds = array<i64: 1, 256>}, {pipeline_mode = #tpu.pipeline_mode<synchronous>, transform_indices = @transform_5, window_bounds = array<i64: 256, 128>}, {pipeline_mode = #tpu.pipeline_mode<synchronous>, transform_indices = @transform_6, window_bounds = array<i64: 1, 128>}, {transform_indices = @transform_7, window_bounds = array<i64: 32, 128>}]} {
    %c0 = arith.constant 0 : index
    %c0_0 = arith.constant 0 : index
    %0 = vector.load %arg1[%c0, %c0_0] : memref<32x128xf32, #tpu.memory_space<vmem>>, vector<32x128xf32>
    %cst = arith.constant dense<0.000000e+00> : vector<32xf32>
    %1 = vector.multi_reduction <add>, %0, %cst [1] : vector<32x128xf32> to vector<32xf32>
    %2 = vector.shape_cast %1 : vector<32xf32> to vector<32x1xf32>
    %cst_1 = arith.constant 1.280000e+02 : f32
    %3 = vector.broadcast %cst_1 : f32 to vector<32x1xf32>
    %4 = arith.divf %2, %3 : vector<32x1xf32>
    %5 = vector.broadcast %4 : vector<32x1xf32> to vector<32x128xf32>
    %6 = arith.subf %0, %5 : vector<32x128xf32>
    %7 = arith.mulf %6, %6 : vector<32x128xf32>
    %cst_2 = arith.constant dense<0.000000e+00> : vector<32xf32>
    %8 = vector.multi_reduction <add>, %7, %cst_2 [1] : vector<32x128xf32> to vector<32xf32>
    %9 = vector.shape_cast %8 : vector<32xf32> to vector<32x1xf32>
    %cst_3 = arith.constant 1.280000e+02 : f32
    %10 = vector.broadcast %cst_3 : f32 to vector<32x1xf32>
    %11 = arith.divf %9, %10 : vector<32x1xf32>
    %cst_4 = arith.constant 9.99999974E-6 : f32
    %12 = vector.broadcast %cst_4 : f32 to vector<32x1xf32>
    %13 = arith.addf %11, %12 : vector<32x1xf32>
    %14 = math.rsqrt %13 : vector<32x1xf32>
    %15 = vector.broadcast %14 : vector<32x1xf32> to vector<32x128xf32>
    %16 = arith.mulf %6, %15 : vector<32x128xf32>
    %c0_5 = arith.constant 0 : index
    %c0_6 = arith.constant 0 : index
    %17 = vector.load %arg2[%c0_5, %c0_6] : memref<1x128xf32, #tpu.memory_space<vmem>>, vector<1x128xf32>
    %18 = vector.broadcast %17 : vector<1x128xf32> to vector<32x128xf32>
    %19 = arith.mulf %16, %18 : vector<32x128xf32>
    %c0_7 = arith.constant 0 : index
    %c0_8 = arith.constant 0 : index
    %20 = vector.load %arg3[%c0_7, %c0_8] : memref<1x128xf32, #tpu.memory_space<vmem>>, vector<1x128xf32>
    %21 = vector.broadcast %20 : vector<1x128xf32> to vector<32x128xf32>
    %22 = arith.addf %19, %21 : vector<32x128xf32>
    %23 = arith.truncf %22 : vector<32x128xf32> to vector<32x128xbf16>
    %c0_9 = arith.constant 0 : index
    %c0_10 = arith.constant 0 : index
    %24 = vector.load %arg4[%c0_9, %c0_10] : memref<128x256xbf16, #tpu.memory_space<vmem>>, vector<128x256xbf16>
    %cst_11 = arith.constant dense<0.000000e+00> : vector<32x256xf32>
    %25 = tpu.matmul %23, %24, %cst_11 {dimension_numbers = #tpu.dot_dimension_numbers<[1], [0], [0], [1], [0, 0, 1, 1], [], []>} : vector<32x128xbf16>, vector<128x256xbf16>, vector<32x256xf32> -> vector<32x256xf32>
    %c0_12 = arith.constant 0 : index
    %c0_13 = arith.constant 0 : index
    %26 = vector.load %arg5[%c0_12, %c0_13] : memref<1x256xf32, #tpu.memory_space<vmem>>, vector<1x256xf32>
    %27 = vector.broadcast %26 : vector<1x256xf32> to vector<32x256xf32>
    %28 = arith.addf %25, %27 : vector<32x256xf32>
    %cst_14 = arith.constant 5.000000e-01 : f32
    %29 = vector.broadcast %cst_14 : f32 to vector<32x256xf32>
    %30 = arith.mulf %29, %28 : vector<32x256xf32>
    %cst_15 = arith.constant 0.707106769 : f32
    %31 = vector.broadcast %cst_15 : f32 to vector<32x256xf32>
    %32 = arith.mulf %28, %31 : vector<32x256xf32>
    %33 = math.erf %32 : vector<32x256xf32>
    %cst_16 = arith.constant 1.000000e+00 : f32
    %34 = vector.broadcast %cst_16 : f32 to vector<32x256xf32>
    %35 = arith.addf %34, %33 : vector<32x256xf32>
    %36 = arith.mulf %30, %35 : vector<32x256xf32>
    %37 = arith.truncf %36 : vector<32x256xf32> to vector<32x256xbf16>
    %c0_17 = arith.constant 0 : index
    %c0_18 = arith.constant 0 : index
    %38 = vector.load %arg6[%c0_17, %c0_18] : memref<256x128xbf16, #tpu.memory_space<vmem>>, vector<256x128xbf16>
    %cst_19 = arith.constant dense<0.000000e+00> : vector<32x128xf32>
    %39 = tpu.matmul %37, %38, %cst_19 {dimension_numbers = #tpu.dot_dimension_numbers<[1], [0], [0], [1], [0, 0, 1, 1], [], []>} : vector<32x256xbf16>, vector<256x128xbf16>, vector<32x128xf32> -> vector<32x128xf32>
    %c0_20 = arith.constant 0 : index
    %c0_21 = arith.constant 0 : index
    %40 = vector.load %arg7[%c0_20, %c0_21] : memref<1x128xf32, #tpu.memory_space<vmem>>, vector<1x128xf32>
    %41 = vector.broadcast %40 : vector<1x128xf32> to vector<32x128xf32>
    %42 = arith.addf %39, %41 : vector<32x128xf32>
    %c0_22 = arith.constant 0 : index
    %c0_23 = arith.constant 0 : index
    %43 = vector.load %arg8[%c0_22, %c0_23] : memref<32x128xf32, #tpu.memory_space<vmem>>, vector<32x128xf32>
    tpu.vector_store %arg8[%c0_22, %c0_23], %42 {strides = array<i32>} : memref<32x128xf32, #tpu.memory_space<vmem>>, vector<32x128xf32>,
    return
  }
  func.func @transform_0(%arg0: i32) -> (i32, i32) {
    %c0_i32 = arith.constant 0 : i32
    %c0_i32_0 = arith.constant 0 : i32
    return %arg0, %c0_i32 : i32, i32
  }
  func.func @transform_1(%arg0: i32) -> (i32, i32) {
    %c0_i32 = arith.constant 0 : i32
    %c0_i32_0 = arith.constant 0 : i32
    %c0_i32_1 = arith.constant 0 : i32
    return %c0_i32, %c0_i32_0 : i32, i32
  }
  func.func @transform_2(%arg0: i32) -> (i32, i32) {
    %c0_i32 = arith.constant 0 : i32
    %c0_i32_0 = arith.constant 0 : i32
    %c0_i32_1 = arith.constant 0 : i32
    return %c0_i32, %c0_i32_0 : i32, i32
  }
  func.func @transform_3(%arg0: i32) -> (i32, i32) {
    %c0_i32 = arith.constant 0 : i32
    %c0_i32_0 = arith.constant 0 : i32
    %c0_i32_1 = arith.constant 0 : i32
    return %c0_i32, %c0_i32_0 : i32, i32
  }
  func.func @transform_4(%arg0: i32) -> (i32, i32) {
    %c0_i32 = arith.constant 0 : i32
    %c0_i32_0 = arith.constant 0 : i32
    %c0_i32_1 = arith.constant 0 : i32
    return %c0_i32, %c0_i32_0 : i32, i32
  }
  func.func @transform_5(%arg0: i32) -> (i32, i32) {
    %c0_i32 = arith.constant 0 : i32
    %c0_i32_0 = arith.constant 0 : i32
    %c0_i32_1 = arith.constant 0 : i32
    return %c0_i32, %c0_i32_0 : i32, i32
  }
  func.func @transform_6(%arg0: i32) -> (i32, i32) {
    %c0_i32 = arith.constant 0 : i32
    %c0_i32_0 = arith.constant 0 : i32
    %c0_i32_1 = arith.constant 0 : i32
    return %c0_i32, %c0_i32_0 : i32, i32
  }
  func.func @transform_7(%arg0: i32) -> (i32, i32) {
    %c0_i32 = arith.constant 0 : i32
    %c0_i32_0 = arith.constant 0 : i32
    return %arg0, %c0_i32 : i32, i32
  }
}

</mosaic_0001>

<bundles_post_ra>
// kernel: tpu_custom_call.1
= control target key start
LH: loop header
LB: loop body
LE: loop exit
PB: predicated region body
PF: predicated region fallthrough
CT: control target
= control target key end

     0   :  { %12 = vsyncpa [#allocation3], 0  ;;  %s1612_s0 = inlined_call_operand.hbm [shape: f32[32,128], index: 0, kind: input, shape index: {}]   ;;  %s1613_s1 = inlined_call_operand.hbm [shape: f32[1,128], index: 1, kind: input, shape index: {}]   ;;  %s1614_s2 = inlined_call_operand.vmem [shape: f32[1,128], index: 2, kind: input, shape index: {}]   ;;  %s1615_s3 = inlined_call_operand.hbm [shape: bf16[128,256], index: 3, kind: input, shape index: {}]   ;;  %s1616_s4 = inlined_call_operand.vmem [shape: f32[1,256], index: 4, kind: input, shape index: {}]   ;;  %s1617_s5 = inlined_call_operand.hbm [shape: bf16[256,128], index: 5, kind: input, shape index: {}]   ;;  %s1618_s6 = inlined_call_operand.vmem [shape: f32[1,128], index: 6, kind: input, shape index: {}]   ;;  %s1619_s7 = inlined_call_operand.hbm [shape: f32[32,128], index: 7, kind: output, shape index: {}]  }
   0x1   :  { %13 = vsyncpa [#allocation6], 0 }
   0x2   :  { %14 = vsyncpa [#allocation9], 0  ;;  %s34_s26 = sshll.u32 %s1613_s1, 4  ;;  %s35_s26 = int_to_ptr.hbm [resolvable:$true] %s34_s26 }
   0x3   :  { %15 = vsyncpa [#allocation4], 0  ;;  %s1223_s27 = smov [#allocation5]   ;;  %s20_s8 = sshll.u32 %s1612_s0, 4  ;;  %s21_s8 = int_to_ptr.hbm [resolvable:$true] %s20_s8 }
   0x4   :  { %s36_s28 = sshll.u32 %s1223_s27, 4  ;;  %s1224_s9 = smov [#allocation2]   ;;  %s37_s28 = int_to_ptr.vmem [resolvable:$true] %s36_s28 }
   0x5   :  { %39 = dma.hbm_to_vmem [thread:$0]  %s35_s26, 16, %s37_s28, [#allocation6]  }
   0x6   :  { %s22_s10 = sshll.u32 %s1224_s9, 4  ;;  %s1225_s11 = smov 128   ;;  %s23_s10 = int_to_ptr.vmem [resolvable:$true] %s22_s10 }
   0x7   :  { %s1226_s12 = smov 8   ;;  %s46_s14 = sshll.u32 %s1615_s3, 4  ;;  %s47_s14 = int_to_ptr.hbm [resolvable:$true] %s46_s14 }
   0x8   :  { %28 = dma.hbm_to_vmem [thread:$0]  %s21_s8, 512, %s23_s10, [#allocation3], %s1225_s11, %s1225_s11, %s1226_s12  }
   0x9   :  { %s1227_s15 = smov [#allocation7]   ;;  %s61_s18 = sshll.u32 %s1617_s5, 4  ;;  %s62_s18 = int_to_ptr.hbm [resolvable:$true] %s61_s18 }
   0xa   :  { %s48_s16 = sshll.u32 %s1227_s15, 4  ;;  %s1228_s19 = smov [#allocation8]   ;;  %s49_s16 = int_to_ptr.vmem [resolvable:$true] %s48_s16 }
   0xb   :  { %54 = dma.hbm_to_vmem [thread:$0]  %s47_s14, 2048, %s49_s16, [#allocation6], %s1225_s11, %s1225_s11, %s1226_s12  }
   0xc   :  { %s63_s20 = sshll.u32 %s1228_s19, 4  ;;  %s1229_s21 = smov 64   ;;  %s64_s20 = int_to_ptr.vmem [resolvable:$true] %s63_s20 }
   0xd   :  { %s1230_s22 = smov 4  }
   0xe   :  { %69 = dma.hbm_to_vmem [thread:$0]  %s62_s18, 2048, %s64_s20, [#allocation9], %s1229_s21, %s1229_s21, %s1230_s22  }
   0xf   :  { %1215 = dma.done.wait [#allocation3], 512  }
  0x10   :  { %1216 = vsyncadd [#allocation3], 4294966784 }
  0x11   :  { %1217 = dma.done.wait [#allocation6], 2064  }
  0x12   :  { %1218 = vsyncadd [#allocation6], 4294965232 }
  0x13   :  { %1219 = dma.done.wait [#allocation9], 2048  }
  0x14   :  { %1220 = vsyncadd [#allocation9], 4294965248  ;;  %v90_v0 = vld [vmem:[#allocation2 + $0x10] sm:$0xff]  ;;  %v88_v1 = vld [vmem:[#allocation2] sm:$0xff]  ;;  %v1231_v4 = vmov 128.0   ;;  %s1232_s25 = smov [#allocation10]  }
  0x15   :  { %96 = vadd.xlane.f32.xlu1 %v90_v0  ;;  %92 = vadd.xlane.f32.xlu0 %v88_v1  ;;  %v91_v2 = vld [vmem:[#allocation2 + $0x18] sm:$0xff]  ;;  %v89_v3 = vld [vmem:[#allocation2 + $0x8] sm:$0xff]  ;;  %1069 = vrcp.f32 %v1231_v4  ;;  %v946_v27 = vld [vmem:[#allocation7 + $0x70] sm:$0xf]  ;;  %s871_s26 = sshll.u32 %s1232_s25, 4  ;;  %s873_s28 = sshll.u32 %s1619_s7, 4  ;;  %s872_s26 = int_to_ptr.vmem [resolvable:$true] %s871_s26  ;;  %s874_s28 = int_to_ptr.hbm [resolvable:$true] %s873_s28 }
  0x16   :  { %v1039_v28 = vld [vmem:[#allocation7 + $0x74] sm:$0xf0]  ;;  %v1038_v29 = vld [vmem:[#allocation7 + $0x74] sm:$0xf]  ;;  %v948_v31 = vld [vmem:[#allocation7 + $0x78] sm:$0xf0] }
  0x17   :  { %v947_v30 = vor.u32 %v1039_v28, %v946_v27  ;;  %v951_v32 = vor.u32 %v1038_v29, %v948_v31  ;;  %v938_v33 = vld [vmem:[#allocation7 + $0x60] sm:$0xf]  ;;  %v1037_v34 = vld [vmem:[#allocation7 + $0x64] sm:$0xf0]  ;;  %v1036_v35 = vld [vmem:[#allocation7 + $0x64] sm:$0xf] }
  0x18   :  { %v939_v36 = vor.u32 %v1037_v34, %v938_v33  ;;  %v940_v37 = vld [vmem:[#allocation7 + $0x68] sm:$0xf0]  ;;  %v930_v39 = vld [vmem:[#allocation7 + $0x50] sm:$0xf]  ;;  %v1035_v40 = vld [vmem:[#allocation7 + $0x54] sm:$0xf0] }
  0x19   :  { %299 = vmatpush.bf16.msra.mxu0 %v947_v30  ;;  %318 = vmatpush.bf16.msra.mxu1 %v951_v32  ;;  %v943_v38 = vor.u32 %v1036_v35, %v940_v37  ;;  %v1034_v41 = vld [vmem:[#allocation7 + $0x54] sm:$0xf]  ;;  %v931_v42 = vor.u32 %v1035_v40, %v930_v39  ;;  %v932_v43 = vld [vmem:[#allocation7 + $0x58] sm:$0xf0]  ;;  %v922_v45 = vld [vmem:[#allocation7 + $0x40] sm:$0xf] }
  0x1a   :  { %v935_v44 = vor.u32 %v1034_v41, %v932_v43  ;;  %v1033_v46 = vld [vmem:[#allocation7 + $0x44] sm:$0xf0]  ;;  %v1032_v47 = vld [vmem:[#allocation7 + $0x44] sm:$0xf]  ;;  %v924_v49 = vld [vmem:[#allocation7 + $0x48] sm:$0xf0] }
  0x1b   :  { %v1070_v5 = vpop.eup %1069  ;;  %v923_v48 = vor.u32 %v1033_v46, %v922_v45  ;;  %v927_v50 = vor.u32 %v1032_v47, %v924_v49  ;;  %v914_v51 = vld [vmem:[#allocation7 + $0x30] sm:$0xf]  ;;  %v1031_v52 = vld [vmem:[#allocation7 + $0x34] sm:$0xf0]  ;;  %v1030_v53 = vld [vmem:[#allocation7 + $0x34] sm:$0xf] }
  0x1c   :  { %v101_v6 = vmul.f32 128.0, %v1070_v5  ;;  %vm105_vm0 = vweird.f32 %v1070_v5  ;;  %v915_v54 = vor.u32 %v1031_v52, %v914_v51  ;;  %v916_v55 = vld [vmem:[#allocation7 + $0x38] sm:$0xf0]  ;;  %v906_v57 = vld [vmem:[#allocation7 + $0x20] sm:$0xf] }
  0x1d   :  { %98 = vadd.xlane.f32.xlu1 %v91_v2  ;;  %94 = vadd.xlane.f32.xlu0 %v89_v3  ;;  %v919_v56 = vor.u32 %v1030_v53, %v916_v55  ;;  %v1029_v58 = vld [vmem:[#allocation7 + $0x24] sm:$0xf0]  ;;  %v1028_v59 = vld [vmem:[#allocation7 + $0x24] sm:$0xf]  ;;  %v908_v61 = vld [vmem:[#allocation7 + $0x28] sm:$0xf0] }
  0x1e   :  { %v102_v7 = vsub.f32 1.0, %v101_v6  ;;  %300 = vmatpush.bf16.msra.mxu0 %v939_v36  ;;  %319 = vmatpush.bf16.msra.mxu1 %v943_v38  ;;  %v907_v60 = vor.u32 %v1029_v58, %v906_v57  ;;  %v911_v62 = vor.u32 %v1028_v59, %v908_v61  ;;  %v898_v63 = vld [vmem:[#allocation7 + $0x10] sm:$0xf]  ;;  %v890_v4 = vld [vmem:[#allocation7] sm:$0xf] }
  0x1f   :  { %v1066_v47 = vld [vmem:[#allocation5] ss:$0 sm:$0xff] }
  0x20   :  { %v103_v8 = vmul.f32 %v1070_v5, %v102_v7  ;;  %v1024_v7 = vld [vmem:[#allocation7 + $0x4] sm:$0xf] }
  0x22   :  { %v104_v9 = vadd.f32 %v1070_v5, %v103_v8  ;;  %301 = vmatpush.bf16.msra.mxu0 %v931_v42  ;;  %320 = vmatpush.bf16.msra.mxu1 %v935_v44  ;;  %v892_v8 = vld [vmem:[#allocation7 + $0x8] sm:$0xf0] }
  0x24   :  { %v1291_v10 = vsel %vm105_vm0, %v1070_v5, %v104_v9  ;;  %v1025_v5 = vld [vmem:[#allocation7 + $0x4] sm:$0xf0] }
  0x26   :  { %302 = vmatpush.bf16.msra.mxu0 %v923_v48  ;;  %321 = vmatpush.bf16.msra.mxu1 %v927_v50 }
  0x2a   :  { %303 = vmatpush.bf16.msra.mxu0 %v915_v54  ;;  %322 = vmatpush.bf16.msra.mxu1 %v919_v56  ;;  %v1067_v54 = vld [vmem:[%s1614_s2] ss:$0 sm:$0xff] }
  0x2e   :  { %304 = vmatpush.bf16.msra.mxu0 %v907_v60  ;;  %323 = vmatpush.bf16.msra.mxu1 %v911_v62 }
  0x88   :  { %v97_v11 = vpop.xlane.xlu1 %96  ;;  %v93_v12 = vpop.xlane.xlu0 %92 }
  0x89   :  { %v109_v13 = vmul.f32 %v1291_v10, %v97_v11  ;;  %v107_v14 = vmul.f32 %v1291_v10, %v93_v12 }
  0x8b   :  { %v1295_v15 = vsub.f32 %v90_v0, %v109_v13  ;;  %v1297_v16 = vsub.f32 %v88_v1, %v107_v14  ;;  %v1027_v0 = vld [vmem:[#allocation7 + $0x14] sm:$0xf0]  ;;  %v1026_v1 = vld [vmem:[#allocation7 + $0x14] sm:$0xf]  ;;  %v891_v13 = vor.u32 %v1025_v5, %v890_v4  ;;  %v895_v14 = vor.u32 %v1024_v7, %v892_v8  ;;  %v213_v5 = vld [vmem:[%s1616_s4] sm:$0x3] }
  0x8c   :  { %v1329_v7 = vperm.slane %v213_v5, 1 }
  0x8d   :  { %v117_v17 = vmul.f32 %v1295_v15, %v1295_v15  ;;  %v115_v18 = vmul.f32 %v1297_v16, %v1297_v16 }
  0x8f   :  { %123 = vadd.xlane.f32.xlu0 %v117_v17  ;;  %119 = vadd.xlane.f32.xlu2 %v115_v18 }
  0x90   :  { %v99_v19 = vpop.xlane.xlu1 %98  ;;  %v95_v20 = vpop.xlane.xlu0 %94 }
  0x91   :  { %v110_v21 = vmul.f32 %v1291_v10, %v99_v19  ;;  %v108_v22 = vmul.f32 %v1291_v10, %v95_v20 }
  0x93   :  { %v1305_v23 = vsub.f32 %v91_v2, %v110_v21  ;;  %v1307_v24 = vsub.f32 %v89_v3, %v108_v22  ;;  %v899_v2 = vor.u32 %v1027_v0, %v898_v63  ;;  %v900_v3 = vld [vmem:[#allocation7 + $0x18] sm:$0xf0] }
  0x94   :  { %v903_v6 = vor.u32 %v1026_v1, %v900_v3 }
  0x95   :  { %v118_v25 = vmul.f32 %v1305_v23, %v1305_v23  ;;  %v116_v26 = vmul.f32 %v1307_v24, %v1307_v24  ;;  %305 = vmatpush.bf16.msra.mxu0 %v899_v2 }
  0x96   :  { %324 = vmatpush.bf16.msra.mxu1 %v903_v6  ;;  %v1327_v6 = vperm.slane %v213_v5, 0 }
  0x97   :  { %125 = vadd.xlane.f32.xlu1 %v118_v25  ;;  %121 = vadd.xlane.f32.xlu2 %v116_v26 }
  0x99   :  { %306 = vmatpush.bf16.msra.mxu0 %v891_v13  ;;  %v1047_v13 = vld [vmem:[#allocation8 + $0x38] sm:$0xff] }
  0x9a   :  { %325 = vmatpush.bf16.msra.mxu1 %v895_v14  ;;  %v1055_v14 = vld [vmem:[#allocation8 + $0x78] sm:$0xff]  ;;  %825 = vmatpush.bf16.msra.mxu2 %v1047_v13 }
  0x9b   :  { %844 = vmatpush.bf16.msra.mxu3 %v1055_v14 }
 0x102   :  { %v120_v9 = vpop.xlane.xlu2 %119  ;;  %v124_v12 = vpop.xlane.xlu0 %123 }
 0x103   :  { %v127_v11 = vmul.f32 %v120_v9, %v1291_v10  ;;  %v129_v18 = vmul.f32 %v124_v12, %v1291_v10 }
 0x105   :  { %v131_v17 = vadd.f32 1e-05, %v127_v11  ;;  %v133_v19 = vadd.f32 1e-05, %v129_v18 }
 0x107   :  { %1071 = vrsqrt.f32 %v131_v17  ;;  %vm141_vm2 = vweird.f32 %v131_v17  ;;  %vm161_vm9 = vweird.f32 %v133_v19 }
 0x108   :  { %1073 = vrsqrt.f32 %v133_v19 }
 0x10a   :  { %v126_v20 = vpop.xlane.xlu1 %125  ;;  %v122_v21 = vpop.xlane.xlu2 %121 }
 0x10b   :  { %v130_v22 = vmul.f32 %v126_v20, %v1291_v10  ;;  %v128_v25 = vmul.f32 %v122_v21, %v1291_v10  ;;  %v1046_v21 = vld [vmem:[#allocation8 + $0x30] sm:$0xff] }
 0x10c   :  { %826 = vmatpush.bf16.msra.mxu2 %v1046_v21 }
 0x10d   :  { %v1072_v26 = vpop.eup %1071  ;;  %v134_v27 = vadd.f32 1e-05, %v130_v22  ;;  %v132_v28 = vadd.f32 1e-05, %v128_v25  ;;  %v1054_v22 = vld [vmem:[#allocation8 + $0x70] sm:$0xff] }
 0x10e   :  { %v136_v29 = vmul.f32 %v1072_v26, %v131_v17  ;;  %v1074_v32 = vpop.eup %1073  ;;  %vm142_vm1 = vweird.f32 %v1072_v26  ;;  %845 = vmatpush.bf16.msra.mxu3 %v1054_v22 }
 0x10f   :  { %1075 = vrsqrt.f32 %v134_v27  ;;  %v156_v38 = vmul.f32 %v1074_v32, %v133_v19  ;;  %vm143_vm3 = vmor %vm141_vm2, %vm142_vm1  ;;  %vm151_vm5 = vweird.f32 %v132_v28  ;;  %vm171_vm7 = vweird.f32 %v134_v27 }
 0x110   :  { %v137_v30 = vmul.f32 %v1072_v26, %v136_v29  ;;  %1077 = vrsqrt.f32 %v132_v28  ;;  %vm162_vm10 = vweird.f32 %v1074_v32 }
 0x111   :  { %v157_v41 = vmul.f32 %v1074_v32, %v156_v38  ;;  %vm163_vm12 = vmor %vm161_vm9, %vm162_vm10 }
 0x112   :  { %v138_v31 = vmul.f32 0.5, %v137_v30 }
 0x113   :  { %v158_v48 = vmul.f32 0.5, %v157_v41  ;;  %v1044_v41 = vld [vmem:[#allocation8 + $0x20] sm:$0xff] }
 0x114   :  { %v139_v33 = vsub.f32 1.5, %v138_v31 }
 0x115   :  { %v1076_v34 = vpop.eup %1075  ;;  %v159_v55 = vsub.f32 1.5, %v158_v48 }
 0x116   :  { %v1078_v35 = vpop.eup %1077  ;;  %v166_v36 = vmul.f32 %v1076_v34, %v134_v27  ;;  %v140_v37 = vmul.f32 %v1072_v26, %v139_v33  ;;  %vm172_vm8 = vweird.f32 %v1076_v34 }
 0x117   :  { %v146_v39 = vmul.f32 %v1078_v35, %v132_v28  ;;  %vm152_vm4 = vweird.f32 %v1078_v35  ;;  %vm173_vm11 = vmor %vm171_vm7, %vm172_vm8  ;;  %v160_v59 = vmul.f32 %v1074_v32, %v159_v55 }
 0x118   :  { %v167_v10 = vmul.f32 %v1076_v34, %v166_v36  ;;  %v144_v43 = vsel %vm143_vm3, %v1072_v26, %v140_v37  ;;  %vm153_vm6 = vmor %vm151_vm5, %vm152_vm4  ;;  %v1053_v36 = vld [vmem:[#allocation8 + $0x68] sm:$0xff] }
 0x119   :  { %v147_v40 = vmul.f32 %v1078_v35, %v146_v39  ;;  %v175_v46 = vmul.f32 %v144_v43, %v1297_v16  ;;  %846 = vmatpush.bf16.msra.mxu3 %v1053_v36 }
 0x11a   :  { %v168_v44 = vmul.f32 0.5, %v167_v10 }
 0x11b   :  { %v148_v42 = vmul.f32 0.5, %v147_v40  ;;  %v183_v53 = vmul.f32 %v1066_v47, %v175_v46 }
 0x11c   :  { %v169_v50 = vsub.f32 1.5, %v168_v44 }
 0x11d   :  { %v149_v45 = vsub.f32 1.5, %v148_v42  ;;  %v191_v57 = vadd.f32 %v1067_v54, %v183_v53  ;;  %v1052_v42 = vld [vmem:[#allocation8 + $0x60] sm:$0xff] }
 0x11e   :  { %v170_v16 = vmul.f32 %v1076_v34, %v169_v50  ;;  %847 = vmatpush.bf16.msra.mxu3 %v1052_v42 }
 0x11f   :  { %v150_v49 = vmul.f32 %v1078_v35, %v149_v45 }
 0x120   :  { %v174_v61 = vsel %vm173_vm11, %v1076_v34, %v170_v16 }
 0x121   :  { %v154_v51 = vsel %vm153_vm6, %v1078_v35, %v150_v49  ;;  %v178_v62 = vmul.f32 %v174_v61, %v1305_v23  ;;  %v1045_v35 = vld [vmem:[#allocation8 + $0x28] sm:$0xff] }
 0x122   :  { %v176_v52 = vmul.f32 %v154_v51, %v1307_v24  ;;  %v164_v24 = vsel %vm163_vm12, %v1074_v32, %v160_v59  ;;  %827 = vmatpush.bf16.msra.mxu2 %v1045_v35  ;;  %v1043_v59 = vld [vmem:[#allocation8 + $0x18] sm:$0xff] }
 0x123   :  { %v177_v63 = vmul.f32 %v164_v24, %v1295_v15  ;;  %v186_v0 = vmul.f32 %v1066_v47, %v178_v62 }
 0x124   :  { %v184_v56 = vmul.f32 %v1066_v47, %v176_v52 }
 0x125   :  { %v185_v1 = vmul.f32 %v1066_v47, %v177_v63  ;;  %v194_v2 = vadd.f32 %v1067_v54, %v186_v0  ;;  %v1042_v0 = vld [vmem:[#allocation8 + $0x10] sm:$0xff] }
 0x126   :  { %v192_v58 = vadd.f32 %v1067_v54, %v184_v56  ;;  %828 = vmatpush.bf16.msra.mxu2 %v1044_v41  ;;  %v1048_v41 = vld [vmem:[#allocation8 + $0x40] sm:$0xff] }
 0x127   :  { %v193_v3 = vadd.f32 %v1067_v54, %v185_v1  ;;  %v1050_v1 = vld [vmem:[#allocation8 + $0x50] sm:$0xff] }
 0x128   :  { %v195_v60 = vpack.c.bf16 %v192_v58, %v191_v57 }
 0x129   :  { %v196_v4 = vpack.c.bf16 %v194_v2, %v193_v3 }
 0x12a   :  { %307 = vmatmul.bf16.vlgmr.msra.gmra.mxu0 %v195_v60  ;;  %326 = vmatmul.bf16.vlgmr.msra.gmra.mxu1 %v195_v60  ;;  %v1051_v60 = vld [vmem:[#allocation8 + $0x58] sm:$0xff] }
 0x12b   :  { %829 = vmatpush.bf16.msra.mxu2 %v1043_v59  ;;  %848 = vmatpush.bf16.msra.mxu3 %v1051_v60 }
 0x12f   :  { %830 = vmatpush.bf16.msra.mxu2 %v1042_v0  ;;  %849 = vmatpush.bf16.msra.mxu3 %v1050_v1 }
 0x13a   :  { %312 = vmatmul.bf16.gmra.mxu0 %v196_v4  ;;  %331 = vmatmul.bf16.gmra.mxu1 %v196_v4 }
 0x1a7   :  { %v308_v8 = vpop.f32.mrf.mxu0  ;;  %v327_v9 = vpop.f32.mrf.mxu1 }
 0x1a8   :  { %v1332_v23 = vadd.f32 %v308_v8, %v1327_v6  ;;  %v1335_v15 = vadd.f32 %v327_v9, %v1329_v7 }
 0x1aa   :  { %v1338_v11 = vmul.f32 0.70710677, %v1332_v23  ;;  %v1341_v12 = vmul.f32 0.70710677, %v1335_v15 }
 0x1ac   :  { %v353_v17 = vmul.f32 %v1338_v11, %v1338_v11  ;;  %v393_v18 = vmul.f32 %v1341_v12, %v1341_v12 }
 0x1ae   :  { %v1347_v19 = vmin.f32 %v353_v17, 16.0  ;;  %v1349_v20 = vmin.f32 %v393_v18, 16.0 }
 0x1af   :  { %v310_v25 = vpop.f32.mrf.mxu0  ;;  %v329_v26 = vpop.f32.mrf.mxu1 }
 0x1b0   :  { %v355_v27 = vmul.f32 2.1237322e-06, %v1347_v19  ;;  %v1353_v28 = vadd.f32 %v310_v25, %v1327_v6  ;;  %v1356_v29 = vadd.f32 %v329_v26, %v1329_v7  ;;  %v366_v30 = vmul.f32 3.8918573e-05, %v1347_v19  ;;  %v1041_v25 = vld [vmem:[#allocation8 + $0x8] sm:$0xff] }
 0x1b1   :  { %v395_v32 = vmul.f32 2.1237322e-06, %v1349_v20  ;;  %v1049_v26 = vld [vmem:[#allocation8 + $0x48] sm:$0xff]  ;;  %831 = vmatpush.bf16.msra.mxu2 %v1041_v25 }
 0x1b2   :  { %v356_v31 = vadd.f32 0.00028619796, %v355_v27  ;;  %v1361_v33 = vmul.f32 0.70710677, %v1353_v28  ;;  %v1364_v34 = vmul.f32 0.70710677, %v1356_v29  ;;  %850 = vmatpush.bf16.msra.mxu3 %v1049_v26 }
 0x1b3   :  { %v367_v37 = vadd.f32 0.001143296, %v366_v30  ;;  %v396_v40 = vadd.f32 0.00028619796, %v395_v32 }
 0x1b4   :  { %v433_v38 = vmul.f32 %v1361_v33, %v1361_v33  ;;  %v473_v39 = vmul.f32 %v1364_v34, %v1364_v34  ;;  %v357_v10 = vmul.f32 %v356_v31, %v1347_v19 }
 0x1b5   :  { %v368_v43 = vmul.f32 %v367_v37, %v1347_v19  ;;  %v397_v54 = vmul.f32 %v396_v40, %v1349_v20  ;;  %v1040_v40 = vld [vmem:[#allocation8] sm:$0xff] }
 0x1b6   :  { %v1372_v44 = vmin.f32 %v433_v38, 16.0  ;;  %v1374_v45 = vmin.f32 %v473_v39, 16.0  ;;  %v358_v53 = vadd.f32 0.0036580483, %v357_v10  ;;  %v406_v39 = vmul.f32 3.8918573e-05, %v1349_v20  ;;  %832 = vmatpush.bf16.msra.mxu2 %v1040_v40  ;;  %851 = vmatpush.bf16.msra.mxu3 %v1048_v41 }
 0x1b7   :  { %v313_v46 = vpop.f32.mrf.mxu0  ;;  %v332_v47 = vpop.f32.mrf.mxu1  ;;  %v369_v52 = vadd.f32 0.014752088, %v368_v43  ;;  %v398_v4 = vadd.f32 0.0036580483, %v397_v54 }
 0x1b8   :  { %v1377_v48 = vadd.f32 %v313_v46, %v1327_v6  ;;  %v1380_v49 = vadd.f32 %v332_v47, %v1329_v7  ;;  %v435_v50 = vmul.f32 2.1237322e-06, %v1372_v44  ;;  %v475_v51 = vmul.f32 2.1237322e-06, %v1374_v45 }
 0x1b9   :  { %v370_v57 = vmul.f32 %v369_v52, %v1347_v19  ;;  %v359_v3 = vmul.f32 %v358_v53, %v1347_v19  ;;  %v399_v31 = vmul.f32 %v398_v4, %v1349_v20  ;;  %v446_v37 = vmul.f32 3.8918573e-05, %v1372_v44 }
 0x1ba   :  { %v436_v55 = vadd.f32 0.00028619796, %v435_v50  ;;  %v476_v56 = vadd.f32 0.00028619796, %v475_v51  ;;  %v1386_v16 = vmul.f32 0.70710677, %v1377_v48 }
 0x1bb   :  { %v1390_v58 = vmul.f32 0.70710677, %v1380_v49  ;;  %v371_v2 = vadd.f32 0.112945676, %v370_v57  ;;  %v360_v30 = vadd.f32 0.05243302, %v359_v3 }
 0x1bc   :  { %v437_v61 = vmul.f32 %v436_v55, %v1372_v44  ;;  %v477_v24 = vmul.f32 %v476_v56, %v1374_v45  ;;  %v513_v62 = vmul.f32 %v1386_v16, %v1386_v16  ;;  %v400_v46 = vadd.f32 0.05243302, %v399_v31 }
 0x1bd   :  { %v553_v63 = vmul.f32 %v1390_v58, %v1390_v58  ;;  %v372_v27 = vmul.f32 %v371_v2, %v1347_v19  ;;  %v361_v43 = vmul.f32 %v360_v30, %v1347_v19  ;;  %v447_v54 = vadd.f32 0.001143296, %v446_v37 }
 0x1be   :  { %v438_v5 = vadd.f32 0.0036580483, %v437_v61  ;;  %v1399_v8 = vmin.f32 %v513_v62, 16.0  ;;  %v478_v14 = vadd.f32 0.0036580483, %v477_v24  ;;  %v401_v24 = vmul.f32 %v400_v46, %v1349_v20 }
 0x1bf   :  { %v315_v9 = vpop.f32.mrf.mxu0  ;;  %v334_v13 = vpop.f32.mrf.mxu1  ;;  %v1401_v17 = vmin.f32 %v553_v63, 16.0  ;;  %v373_v42 = vadd.f32 0.4994258, %v372_v27  ;;  %v407_v56 = vadd.f32 0.001143296, %v406_v39  ;;  %v448_v62 = vmul.f32 %v447_v54, %v1372_v44 }
 0x1c0   :  { %v515_v18 = vmul.f32 2.1237322e-06, %v1399_v8  ;;  %v1405_v21 = vadd.f32 %v315_v9, %v1327_v6  ;;  %v1408_v22 = vadd.f32 %v334_v13, %v1329_v7  ;;  %v439_v32 = vmul.f32 %v438_v5, %v1372_v44 }
 0x1c1   :  { %v479_v36 = vmul.f32 %v478_v14, %v1374_v45  ;;  %v555_v6 = vmul.f32 2.1237322e-06, %v1401_v17  ;;  %v374_v53 = vmul.f32 %v373_v42, %v1347_v19  ;;  %v362_v61 = vadd.f32 0.18741608, %v361_v43 }
 0x1c2   :  { %v516_v35 = vadd.f32 0.00028619796, %v515_v18  ;;  %v1418_v38 = vmul.f32 0.70710677, %v1405_v21  ;;  %v1422_v10 = vmul.f32 0.70710677, %v1408_v22  ;;  %v408_v3 = vmul.f32 %v407_v56, %v1349_v20 }
 0x1c3   :  { %v440_v47 = vadd.f32 0.05243302, %v439_v32  ;;  %v480_v51 = vadd.f32 0.05243302, %v479_v36  ;;  %v556_v52 = vadd.f32 0.00028619796, %v555_v6  ;;  %v363_v13 = vmul.f32 %v362_v61, %v1347_v19 }
 0x1c4   :  { %v517_v7 = vmul.f32 %v516_v35, %v1399_v8  ;;  %v593_v50 = vmul.f32 %v1418_v38, %v1418_v38  ;;  %v633_v59 = vmul.f32 %v1422_v10, %v1422_v10  ;;  %v1432_v60 = vadd.f32 1.0, %v374_v53 }
 0x1c5   :  { %v441_v63 = vmul.f32 %v440_v47, %v1372_v44  ;;  %v481_v0 = vmul.f32 %v480_v51, %v1374_v45  ;;  %v557_v1 = vmul.f32 %v556_v52, %v1401_v17  ;;  %v1443_v4 = vmul.f32 0.5, %v1332_v23 }
 0x1c6   :  { %v518_v55 = vadd.f32 0.0036580483, %v517_v7  ;;  %v1428_v57 = vmin.f32 %v593_v50, 16.0  ;;  %1079 = vrcp.f32 %v1432_v60  ;;  %v1446_v9 = vmin.f32 %v633_v59, 16.0 }
 0x1c7   :  { %v1450_v14 = vmul.f32 0.5, %v1335_v15  ;;  %v402_v18 = vadd.f32 0.18741608, %v401_v24  ;;  %v449_v25 = vadd.f32 0.014752088, %v448_v62  ;;  %v1453_v31 = vmul.f32 0.5, %v1353_v28 }
 0x1c8   :  { %v519_v2 = vmul.f32 %v518_v55, %v1399_v8  ;;  %v595_v5 = vmul.f32 2.1237322e-06, %v1428_v57  ;;  %v442_v26 = vadd.f32 0.18741608, %v441_v63  ;;  %v482_v27 = vadd.f32 0.18741608, %v481_v0 }
 0x1c9   :  { %v558_v30 = vadd.f32 0.0036580483, %v557_v1  ;;  %v450_v23 = vmul.f32 %v449_v25, %v1372_v44  ;;  %v409_v35 = vadd.f32 0.014752088, %v408_v3  ;;  %v635_v37 = vmul.f32 2.1237322e-06, %v1446_v9 }
 0x1ca   :  { %v520_v32 = vadd.f32 0.05243302, %v519_v2  ;;  %v596_v6 = vadd.f32 0.00028619796, %v595_v5  ;;  %v486_v19 = vmul.f32 3.8918573e-05, %v1374_v45  ;;  %v403_v7 = vmul.f32 %v402_v18, %v1349_v20 }
 0x1cb   :  { %v364_v15 = vadd.f32 1.1283791, %v363_v13  ;;  %v451_v40 = vadd.f32 0.112945676, %v450_v23  ;;  %v443_v41 = vmul.f32 %v442_v26, %v1372_v44  ;;  %v483_v28 = vmul.f32 %v482_v27, %v1374_v45 }
 0x1cc   :  { %v1080_v36 = vpop.eup %1079  ;;  %v559_v42 = vmul.f32 %v558_v30, %v1401_v17  ;;  %v410_v43 = vmul.f32 %v409_v35, %v1349_v20  ;;  %v521_v46 = vmul.f32 %v520_v32, %v1399_v8  ;;  %v487_v51 = vadd.f32 0.001143296, %v486_v19 }
 0x1cd   :  { %v377_v39 = vmul.f32 %v1080_v36, %v1432_v60  ;;  %v452_v50 = vmul.f32 %v451_v40, %v1372_v44  ;;  %v597_v52 = vmul.f32 %v596_v6, %v1428_v57  ;;  %v636_v53 = vadd.f32 0.00028619796, %v635_v37 }
 0x1ce   :  { %vm382_vm13 = vweird.f32 %v1080_v36  ;;  %v411_v54 = vadd.f32 0.112945676, %v410_v43  ;;  %v488_v59 = vmul.f32 %v487_v51, %v1374_v45  ;;  %v526_v61 = vmul.f32 3.8918573e-05, %v1399_v8 }
 0x1cf   :  { %v378_v47 = vsub.f32 1.0, %v377_v39  ;;  %v453_v56 = vadd.f32 0.4994258, %v452_v50  ;;  %vm381_vm14 = vweird.f32 %v1432_v60  ;;  %v385_v24 = vand.u32 2147483647, %v1432_v60 }
 0x1d0   :  { %v387_v62 = vand.u32 2147483648, %v1432_v60  ;;  %v412_v63 = vmul.f32 %v411_v54, %v1349_v20  ;;  %v489_v2 = vadd.f32 0.014752088, %v488_v59  ;;  %v527_v3 = vadd.f32 0.001143296, %v526_v61  ;;  %vm1476_vm15 = vmor %vm381_vm14, %vm382_vm13 }
 0x1d1   :  { %v379_v55 = vmul.f32 %v1080_v36, %v378_v47  ;;  %v454_v1 = vmul.f32 %v453_v56, %v1372_v44  ;;  %v404_v5 = vadd.f32 1.1283791, %v403_v7  ;;  %v598_v13 = vadd.f32 0.0036580483, %v597_v52 }
 0x1d2   :  { %v637_v18 = vmul.f32 %v636_v53, %v1446_v9  ;;  %v413_v26 = vadd.f32 0.4994258, %v412_v63  ;;  %v490_v30 = vmul.f32 %v489_v2, %v1374_v45  ;;  %v528_v44 = vmul.f32 %v527_v3, %v1399_v8 }
 0x1d3   :  { %v380_v0 = vadd.f32 %v1080_v36, %v379_v55  ;;  %v1482_v27 = vadd.f32 1.0, %v454_v1  ;;  %v444_v32 = vadd.f32 1.1283791, %v443_v41  ;;  %v484_v23 = vadd.f32 1.1283791, %v483_v28 }
 0x1d4   :  { %v388_v35 = vor.u32 1.1754944e-38, %v387_v62  ;;  %v414_v6 = vmul.f32 %v413_v26, %v1349_v20  ;;  %v522_v37 = vadd.f32 0.18741608, %v521_v46  ;;  %v560_v19 = vadd.f32 0.05243302, %v559_v42 }
 0x1d5   :  { %v384_v60 = vsel %vm1476_vm15, %v1080_v36, %v380_v0  ;;  %vm386_vm0 = vcmp.eq.f32.partialorder %v385_v24, 8.507059e+37  ;;  %1081 = vrcp.f32 %v1482_v27  ;;  %v365_v7 = vmul.f32 %v364_v15, %v1338_v11 }
 0x1d6   :  { %v389_v39 = vsel %vm386_vm0, %v388_v35, %v384_v60  ;;  %v1489_v36 = vadd.f32 1.0, %v414_v6  ;;  %v606_v40 = vmul.f32 3.8918573e-05, %v1428_v57  ;;  %v599_v43 = vmul.f32 %v598_v13, %v1428_v57 }
 0x1d7   :  { %v638_v47 = vadd.f32 0.0036580483, %v637_v18  ;;  %v491_v41 = vadd.f32 0.112945676, %v490_v30  ;;  %v529_v28 = vadd.f32 0.014752088, %v528_v44  ;;  %v1494_v50 = vmul.f32 %v404_v5, %v1341_v12 }
 0x1d8   :  { %v445_v20 = vmul.f32 %v444_v32, %v1361_v33  ;;  %v1498_v42 = vmul.f32 0.5, %v1356_v29  ;;  %1083 = vrcp.f32 %v1489_v36  ;;  %v1502_v11 = vmul.f32 %v484_v23, %v1364_v34 }
 0x1d9   :  { %v1505_v15 = vmul.f32 %v522_v37, %v1399_v8  ;;  %v561_v46 = vmul.f32 %v560_v19, %v1401_v17  ;;  %v390_v51 = vmul.f32 %v389_v39, %v365_v7  ;;  %v492_v52 = vmul.f32 %v491_v41, %v1374_v45 }
 0x1da   :  { %v530_v12 = vmul.f32 %v529_v28, %v1399_v8  ;;  %v607_v53 = vadd.f32 0.001143296, %v606_v40  ;;  %v566_v33 = vmul.f32 3.8918573e-05, %v1401_v17  ;;  %v1511_v54 = vadd.f32 0.05243302, %v599_v43 }
 0x1db   :  { %v1082_v29 = vpop.eup %1081  ;;  %v639_v55 = vmul.f32 %v638_v47, %v1446_v9  ;;  %vm461_vm1 = vweird.f32 %v1482_v27  ;;  %v646_v34 = vmul.f32 3.8918573e-05, %v1446_v9  ;;  %v465_v59 = vand.u32 2147483647, %v1482_v27 }
 0x1dc   :  { %v457_v56 = vmul.f32 %v1082_v29, %v1482_v27  ;;  %v493_v61 = vadd.f32 0.4994258, %v492_v52  ;;  %v531_v24 = vadd.f32 0.112945676, %v530_v12  ;;  %v467_v62 = vand.u32 2147483648, %v1482_v27 }
 0x1dd   :  { %v608_v63 = vmul.f32 %v607_v53, %v1428_v57  ;;  %v567_v0 = vadd.f32 0.001143296, %v566_v33  ;;  %v647_v1 = vadd.f32 0.001143296, %v646_v34  ;;  %v952_v3 = vclamps-f32 %v390_v51, 1.0 }
 0x1de   :  { %v1084_v2 = vpop.eup %1083  ;;  %v458_v5 = vsub.f32 1.0, %v457_v56  ;;  %v494_v13 = vmul.f32 %v493_v61, %v1374_v45  ;;  %v532_v18 = vmul.f32 %v531_v24, %v1399_v8  ;;  %vm462_vm2 = vweird.f32 %v1082_v29 }
 0x1df   :  { %v417_v25 = vmul.f32 %v1084_v2, %v1489_v36  ;;  %v609_v26 = vadd.f32 0.014752088, %v608_v63  ;;  %v568_v60 = vmul.f32 %v567_v0, %v1401_v17  ;;  %v648_v23 = vmul.f32 %v647_v1, %v1446_v9  ;;  %vm463_vm4 = vmor %vm461_vm1, %vm462_vm2 }
 0x1e0   :  { %v459_v30 = vmul.f32 %v1082_v29, %v458_v5  ;;  %v1524_v44 = vadd.f32 1.0, %v494_v13  ;;  %v533_v32 = vadd.f32 0.4994258, %v532_v18  ;;  %vm1527_vm3 = vcmp.eq.f32.partialorder %v465_v59, 8.507059e+37 }
 0x1e1   :  { %v418_v6 = vsub.f32 1.0, %v417_v25  ;;  %v610_v45 = vmul.f32 %v609_v26, %v1428_v57  ;;  %v569_v37 = vadd.f32 0.014752088, %v568_v60  ;;  %v468_v7 = vor.u32 1.1754944e-38, %v467_v62 }
 0x1e2   :  { %v460_v19 = vadd.f32 %v1082_v29, %v459_v30  ;;  %v427_v39 = vand.u32 2147483648, %v1489_v36  ;;  %1085 = vrcp.f32 %v1524_v44  ;;  %vm422_vm5 = vweird.f32 %v1084_v2 }
 0x1e3   :  { %v419_v40 = vmul.f32 %v1084_v2, %v418_v6  ;;  %v534_v43 = vmul.f32 %v533_v32, %v1399_v8  ;;  %v611_v47 = vadd.f32 0.112945676, %v610_v45  ;;  %v425_v28 = vand.u32 2147483647, %v1489_v36 }
 0x1e4   :  { %v464_v41 = vsel %vm463_vm4, %v1082_v29, %v460_v19  ;;  %v570_v51 = vmul.f32 %v569_v37, %v1401_v17  ;;  %v649_v52 = vadd.f32 0.014752088, %v648_v23  ;;  %vm421_vm6 = vweird.f32 %v1489_v36 }
 0x1e5   :  { %v469_v12 = vsel %vm1527_vm3, %v468_v7, %v464_v41  ;;  %v420_v53 = vadd.f32 %v1084_v2, %v419_v40  ;;  %v1543_v33 = vadd.f32 1.0, %v534_v43  ;;  %v673_v34 = vadd.f32 1.0, %v952_v3  ;;  %vm423_vm7 = vmor %vm421_vm6, %vm422_vm5 }
 0x1e6   :  { %v470_v27 = vmul.f32 %v469_v12, %v445_v20  ;;  %v612_v8 = vmul.f32 %v611_v47, %v1428_v57  ;;  %v571_v56 = vadd.f32 0.112945676, %v570_v51  ;;  %v428_v59 = vor.u32 1.1754944e-38, %v427_v39 }
 0x1e7   :  { %v424_v29 = vsel %vm423_vm7, %v1084_v2, %v420_v53  ;;  %1087 = vrcp.f32 %v1543_v33  ;;  %v650_v61 = vmul.f32 %v649_v52, %v1446_v9  ;;  %v562_v62 = vadd.f32 0.18741608, %v561_v46 }
 0x1e8   :  { %v1086_v24 = vpop.eup %1085  ;;  %v954_v63 = vclamps-f32 %v470_v27, 1.0  ;;  %vm426_vm8 = vcmp.eq.f32.partialorder %v425_v28, 8.507059e+37  ;;  %v613_v0 = vadd.f32 0.4994258, %v612_v8  ;;  %v524_v36 = vadd.f32 1.1283791, %v1505_v15 }
 0x1e9   :  { %v640_v1 = vadd.f32 0.05243302, %v639_v55  ;;  %v429_v20 = vsel %vm426_vm8, %v428_v59, %v424_v29  ;;  %v497_v3 = vmul.f32 %v1086_v24, %v1524_v44  ;;  %v601_v5 = vmul.f32 %v1511_v54, %v1428_v57 }
 0x1ea   :  { %v675_v2 = vadd.f32 1.0, %v954_v63  ;;  %v614_v13 = vmul.f32 %v613_v0, %v1428_v57  ;;  %v572_v18 = vmul.f32 %v571_v56, %v1401_v17  ;;  %v681_v25 = vmul.f32 %v673_v34, %v1443_v4 }
 0x1eb   :  { %v498_v46 = vsub.f32 1.0, %v497_v3  ;;  %v507_v26 = vand.u32 2147483648, %v1524_v44  ;;  %v651_v60 = vadd.f32 0.112945676, %v650_v61  ;;  %v430_v55 = vmul.f32 %v429_v20, %v1494_v50 }
 0x1ec   :  { %v683_v15 = vmul.f32 %v675_v2, %v1453_v31  ;;  %v1558_v30 = vadd.f32 1.0, %v614_v13  ;;  %v573_v32 = vadd.f32 0.4994258, %v572_v18  ;;  %vm502_vm9 = vweird.f32 %v1086_v24 }
 0x1ed   :  { %v1088_v23 = vpop.eup %1087  ;;  %v499_v54 = vmul.f32 %v1086_v24, %v498_v46  ;;  %v505_v35 = vand.u32 2147483647, %v1524_v44  ;;  %v652_v6 = vmul.f32 %v651_v60, %v1446_v9  ;;  %v641_v4 = vmul.f32 %v640_v1, %v1446_v9 }
 0x1ee   :  { %v689_v45 = vpack.c.bf16 %v683_v15, %v681_v25  ;;  %v537_v37 = vmul.f32 %v1088_v23, %v1543_v33  ;;  %1089 = vrcp.f32 %v1558_v30  ;;  %v602_v31 = vadd.f32 0.18741608, %v601_v5 }
 0x1ef   :  { %v500_v19 = vadd.f32 %v1086_v24, %v499_v54  ;;  %vm501_vm10 = vweird.f32 %v1524_v44  ;;  %v508_v50 = vor.u32 1.1754944e-38, %v507_v26  ;;  %v953_v7 = vclamps-f32 %v430_v55, 1.0 }
 0x1f0   :  { %833 = vmatmul.bf16.vlgmr.msra.gmra.mxu2 %v689_v45  ;;  %vm503_vm11 = vmor %vm501_vm10, %vm502_vm9  ;;  %v538_v39 = vsub.f32 1.0, %v537_v37  ;;  %v574_v40 = vmul.f32 %v573_v32, %v1401_v17  ;;  %v653_v43 = vadd.f32 0.4994258, %v652_v6  ;;  %vm506_vm12 = vcmp.eq.f32.partialorder %v505_v35, 8.507059e+37 }
 0x1f1   :  { %v504_v47 = vsel %vm503_vm11, %v1086_v24, %v500_v19  ;;  %v545_v41 = vand.u32 2147483647, %v1543_v33  ;;  %v547_v28 = vand.u32 2147483648, %v1543_v33  ;;  %vm542_vm13 = vweird.f32 %v1088_v23 }
 0x1f2   :  { %v509_v51 = vsel %vm506_vm12, %v508_v50, %v504_v47  ;;  %v539_v52 = vmul.f32 %v1088_v23, %v538_v39  ;;  %v1569_v12 = vadd.f32 1.0, %v574_v40  ;;  %v563_v44 = vmul.f32 %v562_v62, %v1401_v17 }
 0x1f3   :  { %v603_v53 = vmul.f32 %v602_v31, %v1428_v57  ;;  %v510_v27 = vmul.f32 %v509_v51, %v1502_v11  ;;  %v654_v34 = vmul.f32 %v653_v43, %v1446_v9  ;;  %v674_v56 = vadd.f32 1.0, %v953_v7 }
 0x1f4   :  { %v1090_v8 = vpop.eup %1089  ;;  %v540_v29 = vadd.f32 %v1088_v23, %v539_v52  ;;  %vm541_vm14 = vweird.f32 %v1543_v33  ;;  %1091 = vrcp.f32 %v1569_v12  ;;  %v525_v59 = vmul.f32 %v524_v36, %v1386_v16 }
 0x1f5   :  { %v955_v61 = vclamps-f32 %v510_v27, 1.0  ;;  %vm543_vm15 = vmor %vm541_vm14, %vm542_vm13  ;;  %v548_v24 = vor.u32 1.1754944e-38, %v547_v28  ;;  %v617_v17 = vmul.f32 %v1090_v8, %v1558_v30  ;;  %v642_v62 = vadd.f32 0.18741608, %v641_v4 }
 0x1f6   :  { %v544_v57 = vsel %vm543_vm15, %v1088_v23, %v540_v29  ;;  %vm546_vm0 = vcmp.eq.f32.partialorder %v545_v41, 8.507059e+37  ;;  %v1579_v11 = vadd.f32 1.0, %v654_v34  ;;  %v604_v63 = vadd.f32 1.1283791, %v603_v53 }
 0x1f7   :  { %v676_v0 = vadd.f32 1.0, %v955_v61  ;;  %v549_v1 = vsel %vm546_vm0, %v548_v24, %v544_v57  ;;  %v618_v20 = vsub.f32 1.0, %v617_v17  ;;  %v682_v33 = vmul.f32 %v674_v56, %v1450_v14 }
 0x1f8   :  { %v625_v3 = vand.u32 2147483647, %v1558_v30  ;;  %v627_v16 = vand.u32 2147483648, %v1558_v30  ;;  %1093 = vrcp.f32 %v1579_v11  ;;  %v550_v5 = vmul.f32 %v549_v1, %v525_v59 }
 0x1f9   :  { %v684_v36 = vmul.f32 %v676_v0, %v1498_v42  ;;  %v619_v2 = vmul.f32 %v1090_v8, %v618_v20  ;;  %vm622_vm1 = vweird.f32 %v1090_v8  ;;  %vm621_vm2 = vweird.f32 %v1558_v30  ;;  %v1068_v0 = vld [vmem:[%s1618_s6] ss:$0 sm:$0xff] }
 0x1fa   :  { %v1092_v13 = vpop.eup %1091  ;;  %v564_v26 = vadd.f32 1.1283791, %v563_v44  ;;  %v605_v14 = vmul.f32 %v604_v63, %v1418_v38  ;;  %v643_v60 = vmul.f32 %v642_v62, %v1446_v9  ;;  %vm623_vm3 = vmor %vm621_vm2, %vm622_vm1  ;;  %v628_v15 = vor.u32 1.1754944e-38, %v627_v16 }
 0x1fb   :  { %v690_v18 = vpack.c.bf16 %v684_v36, %v682_v33  ;;  %v620_v25 = vadd.f32 %v1090_v8, %v619_v2  ;;  %v577_v46 = vmul.f32 %v1092_v13, %v1569_v12  ;;  %v956_v55 = vclamps-f32 %v550_v5, 1.0 }
 0x1fc   :  { %vm626_vm4 = vcmp.eq.f32.partialorder %v625_v3, 8.507059e+37  ;;  %v341_v54 = vmul.f32 0.5, %v1377_v48  ;;  %v585_v30 = vand.u32 2147483647, %v1569_v12  ;;  %v587_v6 = vand.u32 2147483648, %v1569_v12 }
 0x1fd   :  { %852 = vmatmul.bf16.vlgmr.msra.gmra.mxu3 %v690_v18  ;;  %v624_v42 = vsel %vm623_vm3, %v1090_v8, %v620_v25  ;;  %v578_v32 = vsub.f32 1.0, %v577_v46  ;;  %vm582_vm5 = vweird.f32 %v1092_v13  ;;  %v565_v9 = vmul.f32 %v564_v26, %v1390_v58 }
 0x1fe   :  { %v1094_v23 = vpop.eup %1093  ;;  %v629_v35 = vsel %vm626_vm4, %v628_v15, %v624_v42  ;;  %v343_v37 = vmul.f32 0.5, %v1405_v21  ;;  %v644_v31 = vadd.f32 1.1283791, %v643_v60  ;;  %vm581_vm6 = vweird.f32 %v1569_v12 }
 0x1ff   :  { %v630_v4 = vmul.f32 %v629_v35, %v605_v14  ;;  %v579_v45 = vmul.f32 %v1092_v13, %v578_v32  ;;  %v657_v38 = vmul.f32 %v1094_v23, %v1579_v11  ;;  %v677_v50 = vadd.f32 1.0, %v956_v55  ;;  %vm583_vm7 = vmor %vm581_vm6, %vm582_vm5 }
 0x200   :  { %vm586_vm8 = vcmp.eq.f32.partialorder %v585_v30, 8.507059e+37  ;;  %v588_v39 = vor.u32 1.1754944e-38, %v587_v6  ;;  %v665_v40 = vand.u32 2147483647, %v1579_v11  ;;  %v667_v43 = vand.u32 2147483648, %v1579_v11 }
 0x201   :  { %v958_v19 = vclamps-f32 %v630_v4, 1.0  ;;  %v580_v48 = vadd.f32 %v1092_v13, %v579_v45  ;;  %v658_v7 = vsub.f32 1.0, %v657_v38  ;;  %vm662_vm9 = vweird.f32 %v1094_v23 }
 0x202   :  { %vm661_vm10 = vweird.f32 %v1579_v11  ;;  %v685_v21 = vmul.f32 %v677_v50, %v341_v54  ;;  %v645_v44 = vmul.f32 %v644_v31, %v1422_v10  ;;  %v668_v53 = vor.u32 1.1754944e-38, %v667_v43 }
 0x203   :  { %v679_v47 = vadd.f32 1.0, %v958_v19  ;;  %v584_v41 = vsel %vm583_vm7, %v1092_v13, %v580_v48  ;;  %v659_v28 = vmul.f32 %v1094_v23, %v658_v7  ;;  %vm663_vm11 = vmor %vm661_vm10, %vm662_vm9  ;;  %vm666_vm12 = vcmp.eq.f32.partialorder %v665_v40, 8.507059e+37 }
 0x204   :  { %v589_v58 = vsel %vm586_vm8, %v588_v39, %v584_v41  ;;  %v342_v24 = vmul.f32 0.5, %v1380_v49  ;;  %v344_v17 = vmul.f32 0.5, %v1408_v22 }
 0x205   :  { %v687_v51 = vmul.f32 %v679_v47, %v343_v37  ;;  %v590_v52 = vmul.f32 %v589_v58, %v565_v9  ;;  %v660_v12 = vadd.f32 %v1094_v23, %v659_v28 }
 0x207   :  { %v691_v27 = vpack.c.bf16 %v687_v51, %v685_v21  ;;  %v957_v34 = vclamps-f32 %v590_v52, 1.0  ;;  %v664_v8 = vsel %vm663_vm11, %v1094_v23, %v660_v12 }
 0x208   :  { %v669_v56 = vsel %vm666_vm12, %v668_v53, %v664_v8 }
 0x209   :  { %838 = vmatmul.bf16.gmra.mxu2 %v691_v27  ;;  %v670_v29 = vmul.f32 %v669_v56, %v645_v44  ;;  %v678_v61 = vadd.f32 1.0, %v957_v34 }
 0x20b   :  { %v959_v59 = vclamps-f32 %v670_v29, 1.0  ;;  %v686_v57 = vmul.f32 %v678_v61, %v342_v24 }
 0x20d   :  { %v680_v62 = vadd.f32 1.0, %v959_v59 }
 0x20f   :  { %v688_v11 = vmul.f32 %v680_v62, %v344_v17 }
 0x211   :  { %v692_v63 = vpack.c.bf16 %v688_v11, %v686_v57 }
 0x213   :  { %857 = vmatmul.bf16.gmra.mxu3 %v692_v63 }
 0x273   :  { %v834_v10 = vpop.f32.mrf.mxu2 }
 0x274   :  { %v835_v1 = vadd.f32 %v1068_v0, %v834_v10 }
 0x27b   :  { %v836_v3 = vpop.f32.mrf.mxu2 }
 0x27c   :  { %v837_v16 = vadd.f32 %v1068_v0, %v836_v3 }
 0x280   :  { %v853_v20 = vpop.f32.mrf.mxu3 }
 0x281   :  { %v854_v33 = vadd.f32 %v853_v20, %v835_v1 }
 0x283   :  { %863 = vst [vmem:[#allocation10] sm:$0xff] %v854_v33 }
 0x288   :  { %v855_v36 = vpop.f32.mrf.mxu3 }
 0x289   :  { %v856_v49 = vadd.f32 %v855_v36, %v837_v16 }
 0x28b   :  { %864 = vst [vmem:[#allocation10 + $0x8] sm:$0xff] %v856_v49 }
 0x28c   :  { %v839_v22 = vpop.f32.mrf.mxu2 }
 0x28d   :  { %v840_v5 = vadd.f32 %v1068_v0, %v839_v22 }
 0x294   :  { %v841_v18 = vpop.f32.mrf.mxu2 }
 0x295   :  { %v842_v25 = vadd.f32 %v1068_v0, %v841_v18 }
 0x296   :  { %v858_v2 = vpop.f32.mrf.mxu3 }
 0x297   :  { %v859_v13 = vadd.f32 %v858_v2, %v840_v5 }
 0x299   :  { %865 = vst [vmem:[#allocation10 + $0x10] sm:$0xff] %v859_v13 }
 0x29e   :  { %v860_v46 = vpop.f32.mrf.mxu3 }
 0x29f   :  { %v861_v26 = vadd.f32 %v860_v46, %v842_v25 }
 0x2a1   :  { %866 = vst [vmem:[#allocation10 + $0x18] sm:$0xff] %v861_v26 }
 0x2a2   :  { %879 = dma.vmem_to_hbm [thread:$0]  %s872_s26, 512, %s874_s28, [#allocation4], %s1225_s11, %s1225_s11, %s1226_s12  }
 0x2a3   :  { %1221 = dma.done.wait [#allocation4], 512  }
 0x2a4   :  { %1222 = vsyncadd [#allocation4], 4294966784 }
 0x2a5   :  { %884 = vsyncpa [#allocation3], 1 }
 0x2a6   :  { %885 = vsyncpa [#allocation6], 1 }
 0x2a7   :  { %886 = vsyncpa [#allocation9], 1 }
 0x2a8   :  { %887 = vsyncpa [#allocation4], 1 }

// kernel: tpu_custom_call.1
= control target key start
LH: loop header
LB: loop body
LE: loop exit
PB: predicated region body
PF: predicated region fallthrough
CT: control target
= control target key end

     0   :  { %12 = vsyncpa [#allocation3], 0  ;;  %s1612_s0 = inlined_call_operand.hbm [shape: f32[32,128], index: 0, kind: input, shape index: {}]   ;;  %s1613_s1 = inlined_call_operand.hbm [shape: f32[1,128], index: 1, kind: input, shape index: {}]   ;;  %s1614_s2 = inlined_call_operand.vmem [shape: f32[1,128], index: 2, kind: input, shape index: {}]   ;;  %s1615_s3 = inlined_call_operand.hbm [shape: bf16[128,256], index: 3, kind: input, shape index: {}]   ;;  %s1616_s4 = inlined_call_operand.vmem [shape: f32[1,256], index: 4, kind: input, shape index: {}]   ;;  %s1617_s5 = inlined_call_operand.hbm [shape: bf16[256,128], index: 5, kind: input, shape index: {}]   ;;  %s1618_s6 = inlined_call_operand.vmem [shape: f32[1,128], index: 6, kind: input, shape index: {}]   ;;  %s1619_s7 = inlined_call_operand.hbm [shape: f32[32,128], index: 7, kind: output, shape index: {}]  }
   0x1   :  { %13 = vsyncpa [#allocation6], 0 }
   0x2   :  { %14 = vsyncpa [#allocation9], 0  ;;  %s34_s26 = sshll.u32 %s1613_s1, 4  ;;  %s35_s26 = int_to_ptr.hbm [resolvable:$true] %s34_s26 }
   0x3   :  { %15 = vsyncpa [#allocation4], 0  ;;  %s1223_s27 = smov [#allocation5]   ;;  %s20_s8 = sshll.u32 %s1612_s0, 4  ;;  %s21_s8 = int_to_ptr.hbm [resolvable:$true] %s20_s8 }
   0x4   :  { %s36_s28 = sshll.u32 %s1223_s27, 4  ;;  %s1224_s9 = smov [#allocation2]   ;;  %s37_s28 = int_to_ptr.vmem [resolvable:$true] %s36_s28 }
   0x5   :  { %39 = dma.hbm_to_vmem [thread:$0]  %s35_s26, 16, %s37_s28, [#allocation6]  }
   0x6   :  { %s22_s10 = sshll.u32 %s1224_s9, 4  ;;  %s1225_s11 = smov 128   ;;  %s23_s10 = int_to_ptr.vmem [resolvable:$true] %s22_s10 }
   0x7   :  { %s1226_s12 = smov 8   ;;  %s46_s14 = sshll.u32 %s1615_s3, 4  ;;  %s47_s14 = int_to_ptr.hbm [resolvable:$true] %s46_s14 }
   0x8   :  { %28 = dma.hbm_to_vmem [thread:$0]  %s21_s8, 512, %s23_s10, [#allocation3], %s1225_s11, %s1225_s11, %s1226_s12  }
   0x9   :  { %s1227_s15 = smov [#allocation7]   ;;  %s61_s18 = sshll.u32 %s1617_s5, 4  ;;  %s62_s18 = int_to_ptr.hbm [resolvable:$true] %s61_s18 }
   0xa   :  { %s48_s16 = sshll.u32 %s1227_s15, 4  ;;  %s1228_s19 = smov [#allocation8]   ;;  %s49_s16 = int_to_ptr.vmem [resolvable:$true] %s48_s16 }
   0xb   :  { %54 = dma.hbm_to_vmem [thread:$0]  %s47_s14, 2048, %s49_s16, [#allocation6], %s1225_s11, %s1225_s11, %s1226_s12  }
   0xc   :  { %s63_s20 = sshll.u32 %s1228_s19, 4  ;;  %s1229_s21 = smov 64   ;;  %s64_s20 = int_to_ptr.vmem [resolvable:$true] %s63_s20 }
   0xd   :  { %s1230_s22 = smov 4  }
   0xe   :  { %69 = dma.hbm_to_vmem [thread:$0]  %s62_s18, 2048, %s64_s20, [#allocation9], %s1229_s21, %s1229_s21, %s1230_s22  }
   0xf   :  { %1215 = dma.done.wait [#allocation3], 512  }
  0x10   :  { %1216 = vsyncadd [#allocation3], 4294966784 }
  0x11   :  { %1217 = dma.done.wait [#allocation6], 2064  }
  0x12   :  { %1218 = vsyncadd [#allocation6], 4294965232 }
  0x13   :  { %1219 = dma.done.wait [#allocation9], 2048  }
  0x14   :  { %1220 = vsyncadd [#allocation9], 4294965248  ;;  %v90_v0 = vld [vmem:[#allocation2 + $0x10] sm:$0xff]  ;;  %v88_v1 = vld [vmem:[#allocation2] sm:$0xff]  ;;  %v1231_v4 = vmov 128.0   ;;  %s1232_s25 = smov [#allocation10]  }
  0x15   :  { %96 = vadd.xlane.f32.xlu1 %v90_v0  ;;  %92 = vadd.xlane.f32.xlu0 %v88_v1  ;;  %v91_v2 = vld [vmem:[#allocation2 + $0x18] sm:$0xff]  ;;  %v89_v3 = vld [vmem:[#allocation2 + $0x8] sm:$0xff]  ;;  %1069 = vrcp.f32 %v1231_v4  ;;  %v946_v27 = vld [vmem:[#allocation7 + $0x70] sm:$0xf]  ;;  %s871_s26 = sshll.u32 %s1232_s25, 4  ;;  %s873_s28 = sshll.u32 %s1619_s7, 4  ;;  %s872_s26 = int_to_ptr.vmem [resolvable:$true] %s871_s26  ;;  %s874_s28 = int_to_ptr.hbm [resolvable:$true] %s873_s28 }
  0x16   :  { %v1039_v28 = vld [vmem:[#allocation7 + $0x74] sm:$0xf0]  ;;  %v1038_v29 = vld [vmem:[#allocation7 + $0x74] sm:$0xf]  ;;  %v948_v31 = vld [vmem:[#allocation7 + $0x78] sm:$0xf0] }
  0x17   :  { %v947_v30 = vor.u32 %v1039_v28, %v946_v27  ;;  %v951_v32 = vor.u32 %v1038_v29, %v948_v31  ;;  %v938_v33 = vld [vmem:[#allocation7 + $0x60] sm:$0xf]  ;;  %v1037_v34 = vld [vmem:[#allocation7 + $0x64] sm:$0xf0]  ;;  %v1036_v35 = vld [vmem:[#allocation7 + $0x64] sm:$0xf] }
  0x18   :  { %v939_v36 = vor.u32 %v1037_v34, %v938_v33  ;;  %v940_v37 = vld [vmem:[#allocation7 + $0x68] sm:$0xf0]  ;;  %v930_v39 = vld [vmem:[#allocation7 + $0x50] sm:$0xf]  ;;  %v1035_v40 = vld [vmem:[#allocation7 + $0x54] sm:$0xf0] }
  0x19   :  { %299 = vmatpush.bf16.msra.mxu0 %v947_v30  ;;  %318 = vmatpush.bf16.msra.mxu1 %v951_v32  ;;  %v943_v38 = vor.u32 %v1036_v35, %v940_v37  ;;  %v1034_v41 = vld [vmem:[#allocation7 + $0x54] sm:$0xf]  ;;  %v931_v42 = vor.u32 %v1035_v40, %v930_v39  ;;  %v932_v43 = vld [vmem:[#allocation7 + $0x58] sm:$0xf0]  ;;  %v922_v45 = vld [vmem:[#allocation7 + $0x40] sm:$0xf] }
  0x1a   :  { %v935_v44 = vor.u32 %v1034_v41, %v932_v43  ;;  %v1033_v46 = vld [vmem:[#allocation7 + $0x44] sm:$0xf0]  ;;  %v1032_v47 = vld [vmem:[#allocation7 + $0x44] sm:$0xf]  ;;  %v924_v49 = vld [vmem:[#allocation7 + $0x48] sm:$0xf0] }
  0x1b   :  { %v1070_v5 = vpop.eup %1069  ;;  %v923_v48 = vor.u32 %v1033_v46, %v922_v45  ;;  %v927_v50 = vor.u32 %v1032_v47, %v924_v49  ;;  %v914_v51 = vld [vmem:[#allocation7 + $0x30] sm:$0xf]  ;;  %v1031_v52 = vld [vmem:[#allocation7 + $0x34] sm:$0xf0]  ;;  %v1030_v53 = vld [vmem:[#allocation7 + $0x34] sm:$0xf] }
  0x1c   :  { %v101_v6 = vmul.f32 128.0, %v1070_v5  ;;  %vm105_vm0 = vweird.f32 %v1070_v5  ;;  %v915_v54 = vor.u32 %v1031_v52, %v914_v51  ;;  %v916_v55 = vld [vmem:[#allocation7 + $0x38] sm:$0xf0]  ;;  %v906_v57 = vld [vmem:[#allocation7 + $0x20] sm:$0xf] }
  0x1d   :  { %98 = vadd.xlane.f32.xlu1 %v91_v2  ;;  %94 = vadd.xlane.f32.xlu0 %v89_v3  ;;  %v919_v56 = vor.u32 %v1030_v53, %v916_v55  ;;  %v1029_v58 = vld [vmem:[#allocation7 + $0x24] sm:$0xf0]  ;;  %v1028_v59 = vld [vmem:[#allocation7 + $0x24] sm:$0xf]  ;;  %v908_v61 = vld [vmem:[#allocation7 + $0x28] sm:$0xf0] }
  0x1e   :  { %v102_v7 = vsub.f32 1.0, %v101_v6  ;;  %300 = vmatpush.bf16.msra.mxu0 %v939_v36  ;;  %319 = vmatpush.bf16.msra.mxu1 %v943_v38  ;;  %v907_v60 = vor.u32 %v1029_v58, %v906_v57  ;;  %v911_v62 = vor.u32 %v1028_v59, %v908_v61  ;;  %v898_v63 = vld [vmem:[#allocation7 + $0x10] sm:$0xf]  ;;  %v890_v4 = vld [vmem:[#allocation7] sm:$0xf] }
  0x1f   :  { %v1066_v47 = vld [vmem:[#allocation5] ss:$0 sm:$0xff] }
  0x20   :  { %v103_v8 = vmul.f32 %v1070_v5, %v102_v7  ;;  %v1024_v7 = vld [vmem:[#allocation7 + $0x4] sm:$0xf] }
  0x22   :  { %v104_v9 = vadd.f32 %v1070_v5, %v103_v8  ;;  %301 = vmatpush.bf16.msra.mxu0 %v931_v42  ;;  %320 = vmatpush.bf16.msra.mxu1 %v935_v44  ;;  %v892_v8 = vld [vmem:[#allocation7 + $0x8] sm:$0xf0] }
  0x24   :  { %v1291_v10 = vsel %vm105_vm0, %v1070_v5, %v104_v9  ;;  %v1025_v5 = vld [vmem:[#allocation7 + $0x4] sm:$0xf0] }
  0x26   :  { %302 = vmatpush.bf16.msra.mxu0 %v923_v48  ;;  %321 = vmatpush.bf16.msra.mxu1 %v927_v50 }
  0x2a   :  { %303 = vmatpush.bf16.msra.mxu0 %v915_v54  ;;  %322 = vmatpush.bf16.msra.mxu1 %v919_v56  ;;  %v1067_v54 = vld [vmem:[%s1614_s2] ss:$0 sm:$0xff] }
  0x2e   :  { %304 = vmatpush.bf16.msra.mxu0 %v907_v60  ;;  %323 = vmatpush.bf16.msra.mxu1 %v911_v62 }
  0x88   :  { %v97_v11 = vpop.xlane.xlu1 %96  ;;  %v93_v12 = vpop.xlane.xlu0 %92 }
  0x89   :  { %v109_v13 = vmul.f32 %v1291_v10, %v97_v11  ;;  %v107_v14 = vmul.f32 %v1291_v10, %v93_v12 }
  0x8b   :  { %v1295_v15 = vsub.f32 %v90_v0, %v109_v13  ;;  %v1297_v16 = vsub.f32 %v88_v1, %v107_v14  ;;  %v1027_v0 = vld [vmem:[#allocation7 + $0x14] sm:$0xf0]  ;;  %v1026_v1 = vld [vmem:[#allocation7 + $0x14] sm:$0xf]  ;;  %v891_v13 = vor.u32 %v1025_v5, %v890_v4  ;;  %v895_v14 = vor.u32 %v1024_v7, %v892_v8  ;;  %v213_v5 = vld [vmem:[%s1616_s4] sm:$0x3] }
  0x8c   :  { %v1329_v7 = vperm.slane %v213_v5, 1 }
  0x8d   :  { %v117_v17 = vmul.f32 %v1295_v15, %v1295_v15  ;;  %v115_v18 = vmul.f32 %v1297_v16, %v1297_v16 }
  0x8f   :  { %123 = vadd.xlane.f32.xlu0 %v117_v17  ;;  %119 = vadd.xlane.f32.xlu2 %v115_v18 }
  0x90   :  { %v99_v19 = vpop.xlane.xlu1 %98  ;;  %v95_v20 = vpop.xlane.xlu0 %94 }
  0x91   :  { %v110_v21 = vmul.f32 %v1291_v10, %v99_v19  ;;  %v108_v22 = vmul.f32 %v1291_v10, %v95_v20 }
  0x93   :  { %v1305_v23 = vsub.f32 %v91_v2, %v110_v21  ;;  %v1307_v24 = vsub.f32 %v89_v3, %v108_v22  ;;  %v899_v2 = vor.u32 %v1027_v0, %v898_v63  ;;  %v900_v3 = vld [vmem:[#allocation7 + $0x18] sm:$0xf0] }
  0x94   :  { %v903_v6 = vor.u32 %v1026_v1, %v900_v3 }
  0x95   :  { %v118_v25 = vmul.f32 %v1305_v23, %v1305_v23  ;;  %v116_v26 = vmul.f32 %v1307_v24, %v1307_v24  ;;  %305 = vmatpush.bf16.msra.mxu0 %v899_v2 }
  0x96   :  { %324 = vmatpush.bf16.msra.mxu1 %v903_v6  ;;  %v1327_v6 = vperm.slane %v213_v5, 0 }
  0x97   :  { %125 = vadd.xlane.f32.xlu1 %v118_v25  ;;  %121 = vadd.xlane.f32.xlu2 %v116_v26 }
  0x99   :  { %306 = vmatpush.bf16.msra.mxu0 %v891_v13  ;;  %v1047_v13 = vld [vmem:[#allocation8 + $0x38] sm:$0xff] }
  0x9a   :  { %325 = vmatpush.bf16.msra.mxu1 %v895_v14  ;;  %v1055_v14 = vld [vmem:[#allocation8 + $0x78] sm:$0xff]  ;;  %825 = vmatpush.bf16.msra.mxu2 %v1047_v13 }
  0x9b   :  { %844 = vmatpush.bf16.msra.mxu3 %v1055_v14 }
 0x102   :  { %v120_v9 = vpop.xlane.xlu2 %119  ;;  %v124_v12 = vpop.xlane.xlu0 %123 }
 0x103   :  { %v127_v11 = vmul.f32 %v120_v9, %v1291_v10  ;;  %v129_v18 = vmul.f32 %v124_v12, %v1291_v10 }
 0x105   :  { %v131_v17 = vadd.f32 1e-05, %v127_v11  ;;  %v133_v19 = vadd.f32 1e-05, %v129_v18 }
 0x107   :  { %1071 = vrsqrt.f32 %v131_v17  ;;  %vm141_vm2 = vweird.f32 %v131_v17  ;;  %vm161_vm9 = vweird.f32 %v133_v19 }
 0x108   :  { %1073 = vrsqrt.f32 %v133_v19 }
 0x10a   :  { %v126_v20 = vpop.xlane.xlu1 %125  ;;  %v122_v21 = vpop.xlane.xlu2 %121 }
 0x10b   :  { %v130_v22 = vmul.f32 %v126_v20, %v1291_v10  ;;  %v128_v25 = vmul.f32 %v122_v21, %v1291_v10  ;;  %v1046_v21 = vld [vmem:[#allocation8 + $0x30] sm:$0xff] }
 0x10c   :  { %826 = vmatpush.bf16.msra.mxu2 %v1046_v21 }
 0x10d   :  { %v1072_v26 = vpop.eup %1071  ;;  %v134_v27 = vadd.f32 1e-05, %v130_v22  ;;  %v132_v28 = vadd.f32 1e-05, %v128_v25  ;;  %v1054_v22 = vld [vmem:[#allocation8 + $0x70] sm:$0xff] }
 0x10e   :  { %v136_v29 = vmul.f32 %v1072_v26, %v131_v17  ;;  %v1074_v32 = vpop.eup %1073  ;;  %vm142_vm1 = vweird.f32 %v1072_v26  ;;  %845 = vmatpush.bf16.msra.mxu3 %v1054_v22 }
 0x10f   :  { %1075 = vrsqrt.f32 %v134_v27  ;;  %v156_v38 = vmul.f32 %v1074_v32, %v133_v19  ;;  %vm143_vm3 = vmor %vm141_vm2, %vm142_vm1  ;;  %vm151_vm5 = vweird.f32 %v132_v28  ;;  %vm171_vm7 = vweird.f32 %v134_v27 }
 0x110   :  { %v137_v30 = vmul.f32 %v1072_v26, %v136_v29  ;;  %1077 = vrsqrt.f32 %v132_v28  ;;  %vm162_vm10 = vweird.f32 %v1074_v32 }
 0x111   :  { %v157_v41 = vmul.f32 %v1074_v32, %v156_v38  ;;  %vm163_vm12 = vmor %vm161_vm9, %vm162_vm10 }
 0x112   :  { %v138_v31 = vmul.f32 0.5, %v137_v30 }
 0x113   :  { %v158_v48 = vmul.f32 0.5, %v157_v41  ;;  %v1044_v41 = vld [vmem:[#allocation8 + $0x20] sm:$0xff] }
 0x114   :  { %v139_v33 = vsub.f32 1.5, %v138_v31 }
 0x115   :  { %v1076_v34 = vpop.eup %1075  ;;  %v159_v55 = vsub.f32 1.5, %v158_v48 }
 0x116   :  { %v1078_v35 = vpop.eup %1077  ;;  %v166_v36 = vmul.f32 %v1076_v34, %v134_v27  ;;  %v140_v37 = vmul.f32 %v1072_v26, %v139_v33  ;;  %vm172_vm8 = vweird.f32 %v1076_v34 }
 0x117   :  { %v146_v39 = vmul.f32 %v1078_v35, %v132_v28  ;;  %vm152_vm4 = vweird.f32 %v1078_v35  ;;  %vm173_vm11 = vmor %vm171_vm7, %vm172_vm8  ;;  %v160_v59 = vmul.f32 %v1074_v32, %v159_v55 }
 0x118   :  { %v167_v10 = vmul.f32 %v1076_v34, %v166_v36  ;;  %v144_v43 = vsel %vm143_vm3, %v1072_v26, %v140_v37  ;;  %vm153_vm6 = vmor %vm151_vm5, %vm152_vm4  ;;  %v1053_v36 = vld [vmem:[#allocation8 + $0x68] sm:$0xff] }
 0x119   :  { %v147_v40 = vmul.f32 %v1078_v35, %v146_v39  ;;  %v175_v46 = vmul.f32 %v144_v43, %v1297_v16  ;;  %846 = vmatpush.bf16.msra.mxu3 %v1053_v36 }
 0x11a   :  { %v168_v44 = vmul.f32 0.5, %v167_v10 }
 0x11b   :  { %v148_v42 = vmul.f32 0.5, %v147_v40  ;;  %v183_v53 = vmul.f32 %v1066_v47, %v175_v46 }
 0x11c   :  { %v169_v50 = vsub.f32 1.5, %v168_v44 }
 0x11d   :  { %v149_v45 = vsub.f32 1.5, %v148_v42  ;;  %v191_v57 = vadd.f32 %v1067_v54, %v183_v53  ;;  %v1052_v42 = vld [vmem:[#allocation8 + $0x60] sm:$0xff] }
 0x11e   :  { %v170_v16 = vmul.f32 %v1076_v34, %v169_v50  ;;  %847 = vmatpush.bf16.msra.mxu3 %v1052_v42 }
 0x11f   :  { %v150_v49 = vmul.f32 %v1078_v35, %v149_v45 }
 0x120   :  { %v174_v61 = vsel %vm173_vm11, %v1076_v34, %v170_v16 }
 0x121   :  { %v154_v51 = vsel %vm153_vm6, %v1078_v35, %v150_v49  ;;  %v178_v62 = vmul.f32 %v174_v61, %v1305_v23  ;;  %v1045_v35 = vld [vmem:[#allocation8 + $0x28] sm:$0xff] }
 0x122   :  { %v176_v52 = vmul.f32 %v154_v51, %v1307_v24  ;;  %v164_v24 = vsel %vm163_vm12, %v1074_v32, %v160_v59  ;;  %827 = vmatpush.bf16.msra.mxu2 %v1045_v35  ;;  %v1043_v59 = vld [vmem:[#allocation8 + $0x18] sm:$0xff] }
 0x123   :  { %v177_v63 = vmul.f32 %v164_v24, %v1295_v15  ;;  %v186_v0 = vmul.f32 %v1066_v47, %v178_v62 }
 0x124   :  { %v184_v56 = vmul.f32 %v1066_v47, %v176_v52 }
 0x125   :  { %v185_v1 = vmul.f32 %v1066_v47, %v177_v63  ;;  %v194_v2 = vadd.f32 %v1067_v54, %v186_v0  ;;  %v1042_v0 = vld [vmem:[#allocation8 + $0x10] sm:$0xff] }
 0x126   :  { %v192_v58 = vadd.f32 %v1067_v54, %v184_v56  ;;  %828 = vmatpush.bf16.msra.mxu2 %v1044_v41  ;;  %v1048_v41 = vld [vmem:[#allocation8 + $0x40] sm:$0xff] }
 0x127   :  { %v193_v3 = vadd.f32 %v1067_v54, %v185_v1  ;;  %v1050_v1 = vld [vmem:[#allocation8 + $0x50] sm:$0xff] }
 0x128   :  { %v195_v60 = vpack.c.bf16 %v192_v58, %v191_v57 }
 0x129   :  { %v196_v4 = vpack.c.bf16 %v194_v2, %v193_v3 }
 0x12a   :  { %307 = vmatmul.bf16.vlgmr.msra.gmra.mxu0 %v195_v60  ;;  %326 = vmatmul.bf16.vlgmr.msra.gmra.mxu1 %v195_v60  ;;  %v1051_v60 = vld [vmem:[#allocation8 + $0x58] sm:$0xff] }
 0x12b   :  { %829 = vmatpush.bf16.msra.mxu2 %v1043_v59  ;;  %848 = vmatpush.bf16.msra.mxu3 %v1051_v60 }
 0x12f   :  { %830 = vmatpush.bf16.msra.mxu2 %v1042_v0  ;;  %849 = vmatpush.bf16.msra.mxu3 %v1050_v1 }
 0x13a   :  { %312 = vmatmul.bf16.gmra.mxu0 %v196_v4  ;;  %331 = vmatmul.bf16.gmra.mxu1 %v196_v4 }
 0x1a7   :  { %v308_v8 = vpop.f32.mrf.mxu0  ;;  %v327_v9 = vpop.f32.mrf.mxu1 }
 0x1a8   :  { %v1332_v23 = vadd.f32 %v308_v8, %v1327_v6  ;;  %v1335_v15 = vadd.f32 %v327_v9, %v1329_v7 }
 0x1aa   :  { %v1338_v11 = vmul.f32 0.70710677, %v1332_v23  ;;  %v1341_v12 = vmul.f32 0.70710677, %v1335_v15 }
 0x1ac   :  { %v353_v17 = vmul.f32 %v1338_v11, %v1338_v11  ;;  %v393_v18 = vmul.f32 %v1341_v12, %v1341_v12 }
 0x1ae   :  { %v1347_v19 = vmin.f32 %v353_v17, 16.0  ;;  %v1349_v20 = vmin.f32 %v393_v18, 16.0 }
 0x1af   :  { %v310_v25 = vpop.f32.mrf.mxu0  ;;  %v329_v26 = vpop.f32.mrf.mxu1 }
 0x1b0   :  { %v355_v27 = vmul.f32 2.1237322e-06, %v1347_v19  ;;  %v1353_v28 = vadd.f32 %v310_v25, %v1327_v6  ;;  %v1356_v29 = vadd.f32 %v329_v26, %v1329_v7  ;;  %v366_v30 = vmul.f32 3.8918573e-05, %v1347_v19  ;;  %v1041_v25 = vld [vmem:[#allocation8 + $0x8] sm:$0xff] }
 0x1b1   :  { %v395_v32 = vmul.f32 2.1237322e-06, %v1349_v20  ;;  %v1049_v26 = vld [vmem:[#allocation8 + $0x48] sm:$0xff]  ;;  %831 = vmatpush.bf16.msra.mxu2 %v1041_v25 }
 0x1b2   :  { %v356_v31 = vadd.f32 0.00028619796, %v355_v27  ;;  %v1361_v33 = vmul.f32 0.70710677, %v1353_v28  ;;  %v1364_v34 = vmul.f32 0.70710677, %v1356_v29  ;;  %850 = vmatpush.bf16.msra.mxu3 %v1049_v26 }
 0x1b3   :  { %v367_v37 = vadd.f32 0.001143296, %v366_v30  ;;  %v396_v40 = vadd.f32 0.00028619796, %v395_v32 }
 0x1b4   :  { %v433_v38 = vmul.f32 %v1361_v33, %v1361_v33  ;;  %v473_v39 = vmul.f32 %v1364_v34, %v1364_v34  ;;  %v357_v10 = vmul.f32 %v356_v31, %v1347_v19 }
 0x1b5   :  { %v368_v43 = vmul.f32 %v367_v37, %v1347_v19  ;;  %v397_v54 = vmul.f32 %v396_v40, %v1349_v20  ;;  %v1040_v40 = vld [vmem:[#allocation8] sm:$0xff] }
 0x1b6   :  { %v1372_v44 = vmin.f32 %v433_v38, 16.0  ;;  %v1374_v45 = vmin.f32 %v473_v39, 16.0  ;;  %v358_v53 = vadd.f32 0.0036580483, %v357_v10  ;;  %v406_v39 = vmul.f32 3.8918573e-05, %v1349_v20  ;;  %832 = vmatpush.bf16.msra.mxu2 %v1040_v40  ;;  %851 = vmatpush.bf16.msra.mxu3 %v1048_v41 }
 0x1b7   :  { %v313_v46 = vpop.f32.mrf.mxu0  ;;  %v332_v47 = vpop.f32.mrf.mxu1  ;;  %v369_v52 = vadd.f32 0.014752088, %v368_v43  ;;  %v398_v4 = vadd.f32 0.0036580483, %v397_v54 }
 0x1b8   :  { %v1377_v48 = vadd.f32 %v313_v46, %v1327_v6  ;;  %v1380_v49 = vadd.f32 %v332_v47, %v1329_v7  ;;  %v435_v50 = vmul.f32 2.1237322e-06, %v1372_v44  ;;  %v475_v51 = vmul.f32 2.1237322e-06, %v1374_v45 }
 0x1b9   :  { %v370_v57 = vmul.f32 %v369_v52, %v1347_v19  ;;  %v359_v3 = vmul.f32 %v358_v53, %v1347_v19  ;;  %v399_v31 = vmul.f32 %v398_v4, %v1349_v20  ;;  %v446_v37 = vmul.f32 3.8918573e-05, %v1372_v44 }
 0x1ba   :  { %v436_v55 = vadd.f32 0.00028619796, %v435_v50  ;;  %v476_v56 = vadd.f32 0.00028619796, %v475_v51  ;;  %v1386_v16 = vmul.f32 0.70710677, %v1377_v48 }
 0x1bb   :  { %v1390_v58 = vmul.f32 0.70710677, %v1380_v49  ;;  %v371_v2 = vadd.f32 0.112945676, %v370_v57  ;;  %v360_v30 = vadd.f32 0.05243302, %v359_v3 }
 0x1bc   :  { %v437_v61 = vmul.f32 %v436_v55, %v1372_v44  ;;  %v477_v24 = vmul.f32 %v476_v56, %v1374_v45  ;;  %v513_v62 = vmul.f32 %v1386_v16, %v1386_v16  ;;  %v400_v46 = vadd.f32 0.05243302, %v399_v31 }
 0x1bd   :  { %v553_v63 = vmul.f32 %v1390_v58, %v1390_v58  ;;  %v372_v27 = vmul.f32 %v371_v2, %v1347_v19  ;;  %v361_v43 = vmul.f32 %v360_v30, %v1347_v19  ;;  %v447_v54 = vadd.f32 0.001143296, %v446_v37 }
 0x1be   :  { %v438_v5 = vadd.f32 0.0036580483, %v437_v61  ;;  %v1399_v8 = vmin.f32 %v513_v62, 16.0  ;;  %v478_v14 = vadd.f32 0.0036580483, %v477_v24  ;;  %v401_v24 = vmul.f32 %v400_v46, %v1349_v20 }
 0x1bf   :  { %v315_v9 = vpop.f32.mrf.mxu0  ;;  %v334_v13 = vpop.f32.mrf.mxu1  ;;  %v1401_v17 = vmin.f32 %v553_v63, 16.0  ;;  %v373_v42 = vadd.f32 0.4994258, %v372_v27  ;;  %v407_v56 = vadd.f32 0.001143296, %v406_v39  ;;  %v448_v62 = vmul.f32 %v447_v54, %v1372_v44 }
 0x1c0   :  { %v515_v18 = vmul.f32 2.1237322e-06, %v1399_v8  ;;  %v1405_v21 = vadd.f32 %v315_v9, %v1327_v6  ;;  %v1408_v22 = vadd.f32 %v334_v13, %v1329_v7  ;;  %v439_v32 = vmul.f32 %v438_v5, %v1372_v44 }
 0x1c1   :  { %v479_v36 = vmul.f32 %v478_v14, %v1374_v45  ;;  %v555_v6 = vmul.f32 2.1237322e-06, %v1401_v17  ;;  %v374_v53 = vmul.f32 %v373_v42, %v1347_v19  ;;  %v362_v61 = vadd.f32 0.18741608, %v361_v43 }
 0x1c2   :  { %v516_v35 = vadd.f32 0.00028619796, %v515_v18  ;;  %v1418_v38 = vmul.f32 0.70710677, %v1405_v21  ;;  %v1422_v10 = vmul.f32 0.70710677, %v1408_v22  ;;  %v408_v3 = vmul.f32 %v407_v56, %v1349_v20 }
 0x1c3   :  { %v440_v47 = vadd.f32 0.05243302, %v439_v32  ;;  %v480_v51 = vadd.f32 0.05243302, %v479_v36  ;;  %v556_v52 = vadd.f32 0.00028619796, %v555_v6  ;;  %v363_v13 = vmul.f32 %v362_v61, %v1347_v19 }
 0x1c4   :  { %v517_v7 = vmul.f32 %v516_v35, %v1399_v8  ;;  %v593_v50 = vmul.f32 %v1418_v38, %v1418_v38  ;;  %v633_v59 = vmul.f32 %v1422_v10, %v1422_v10  ;;  %v1432_v60 = vadd.f32 1.0, %v374_v53 }
 0x1c5   :  { %v441_v63 = vmul.f32 %v440_v47, %v1372_v44  ;;  %v481_v0 = vmul.f32 %v480_v51, %v1374_v45  ;;  %v557_v1 = vmul.f32 %v556_v52, %v1401_v17  ;;  %v1443_v4 = vmul.f32 0.5, %v1332_v23 }
 0x1c6   :  { %v518_v55 = vadd.f32 0.0036580483, %v517_v7  ;;  %v1428_v57 = vmin.f32 %v593_v50, 16.0  ;;  %1079 = vrcp.f32 %v1432_v60  ;;  %v1446_v9 = vmin.f32 %v633_v59, 16.0 }
 0x1c7   :  { %v1450_v14 = vmul.f32 0.5, %v1335_v15  ;;  %v402_v18 = vadd.f32 0.18741608, %v401_v24  ;;  %v449_v25 = vadd.f32 0.014752088, %v448_v62  ;;  %v1453_v31 = vmul.f32 0.5, %v1353_v28 }
 0x1c8   :  { %v519_v2 = vmul.f32 %v518_v55, %v1399_v8  ;;  %v595_v5 = vmul.f32 2.1237322e-06, %v1428_v57  ;;  %v442_v26 = vadd.f32 0.18741608, %v441_v63  ;;  %v482_v27 = vadd.f32 0.18741608, %v481_v0 }
 0x1c9   :  { %v558_v30 = vadd.f32 0.0036580483, %v557_v1  ;;  %v450_v23 = vmul.f32 %v449_v25, %v1372_v44  ;;  %v409_v35 = vadd.f32 0.014752088, %v408_v3  ;;  %v635_v37 = vmul.f32 2.1237322e-06, %v1446_v9 }
 0x1ca   :  { %v520_v32 = vadd.f32 0.05243302, %v519_v2  ;;  %v596_v6 = vadd.f32 0.00028619796, %v595_v5  ;;  %v486_v19 = vmul.f32 3.8918573e-05, %v1374_v45  ;;  %v403_v7 = vmul.f32 %v402_v18, %v1349_v20 }
 0x1cb   :  { %v364_v15 = vadd.f32 1.1283791, %v363_v13  ;;  %v451_v40 = vadd.f32 0.112945676, %v450_v23  ;;  %v443_v41 = vmul.f32 %v442_v26, %v1372_v44  ;;  %v483_v28 = vmul.f32 %v482_v27, %v1374_v45 }
 0x1cc   :  { %v1080_v36 = vpop.eup %1079  ;;  %v559_v42 = vmul.f32 %v558_v30, %v1401_v17  ;;  %v410_v43 = vmul.f32 %v409_v35, %v1349_v20  ;;  %v521_v46 = vmul.f32 %v520_v32, %v1399_v8  ;;  %v487_v51 = vadd.f32 0.001143296, %v486_v19 }
 0x1cd   :  { %v377_v39 = vmul.f32 %v1080_v36, %v1432_v60  ;;  %v452_v50 = vmul.f32 %v451_v40, %v1372_v44  ;;  %v597_v52 = vmul.f32 %v596_v6, %v1428_v57  ;;  %v636_v53 = vadd.f32 0.00028619796, %v635_v37 }
 0x1ce   :  { %vm382_vm13 = vweird.f32 %v1080_v36  ;;  %v411_v54 = vadd.f32 0.112945676, %v410_v43  ;;  %v488_v59 = vmul.f32 %v487_v51, %v1374_v45  ;;  %v526_v61 = vmul.f32 3.8918573e-05, %v1399_v8 }
 0x1cf   :  { %v378_v47 = vsub.f32 1.0, %v377_v39  ;;  %v453_v56 = vadd.f32 0.4994258, %v452_v50  ;;  %vm381_vm14 = vweird.f32 %v1432_v60  ;;  %v385_v24 = vand.u32 2147483647, %v1432_v60 }
 0x1d0   :  { %v387_v62 = vand.u32 2147483648, %v1432_v60  ;;  %v412_v63 = vmul.f32 %v411_v54, %v1349_v20  ;;  %v489_v2 = vadd.f32 0.014752088, %v488_v59  ;;  %v527_v3 = vadd.f32 0.001143296, %v526_v61  ;;  %vm1476_vm15 = vmor %vm381_vm14, %vm382_vm13 }
 0x1d1   :  { %v379_v55 = vmul.f32 %v1080_v36, %v378_v47  ;;  %v454_v1 = vmul.f32 %v453_v56, %v1372_v44  ;;  %v404_v5 = vadd.f32 1.1283791, %v403_v7  ;;  %v598_v13 = vadd.f32 0.0036580483, %v597_v52 }
 0x1d2   :  { %v637_v18 = vmul.f32 %v636_v53, %v1446_v9  ;;  %v413_v26 = vadd.f32 0.4994258, %v412_v63  ;;  %v490_v30 = vmul.f32 %v489_v2, %v1374_v45  ;;  %v528_v44 = vmul.f32 %v527_v3, %v1399_v8 }
 0x1d3   :  { %v380_v0 = vadd.f32 %v1080_v36, %v379_v55  ;;  %v1482_v27 = vadd.f32 1.0, %v454_v1  ;;  %v444_v32 = vadd.f32 1.1283791, %v443_v41  ;;  %v484_v23 = vadd.f32 1.1283791, %v483_v28 }
 0x1d4   :  { %v388_v35 = vor.u32 1.1754944e-38, %v387_v62  ;;  %v414_v6 = vmul.f32 %v413_v26, %v1349_v20  ;;  %v522_v37 = vadd.f32 0.18741608, %v521_v46  ;;  %v560_v19 = vadd.f32 0.05243302, %v559_v42 }
 0x1d5   :  { %v384_v60 = vsel %vm1476_vm15, %v1080_v36, %v380_v0  ;;  %vm386_vm0 = vcmp.eq.f32.partialorder %v385_v24, 8.507059e+37  ;;  %1081 = vrcp.f32 %v1482_v27  ;;  %v365_v7 = vmul.f32 %v364_v15, %v1338_v11 }
 0x1d6   :  { %v389_v39 = vsel %vm386_vm0, %v388_v35, %v384_v60  ;;  %v1489_v36 = vadd.f32 1.0, %v414_v6  ;;  %v606_v40 = vmul.f32 3.8918573e-05, %v1428_v57  ;;  %v599_v43 = vmul.f32 %v598_v13, %v1428_v57 }
 0x1d7   :  { %v638_v47 = vadd.f32 0.0036580483, %v637_v18  ;;  %v491_v41 = vadd.f32 0.112945676, %v490_v30  ;;  %v529_v28 = vadd.f32 0.014752088, %v528_v44  ;;  %v1494_v50 = vmul.f32 %v404_v5, %v1341_v12 }
 0x1d8   :  { %v445_v20 = vmul.f32 %v444_v32, %v1361_v33  ;;  %v1498_v42 = vmul.f32 0.5, %v1356_v29  ;;  %1083 = vrcp.f32 %v1489_v36  ;;  %v1502_v11 = vmul.f32 %v484_v23, %v1364_v34 }
 0x1d9   :  { %v1505_v15 = vmul.f32 %v522_v37, %v1399_v8  ;;  %v561_v46 = vmul.f32 %v560_v19, %v1401_v17  ;;  %v390_v51 = vmul.f32 %v389_v39, %v365_v7  ;;  %v492_v52 = vmul.f32 %v491_v41, %v1374_v45 }
 0x1da   :  { %v530_v12 = vmul.f32 %v529_v28, %v1399_v8  ;;  %v607_v53 = vadd.f32 0.001143296, %v606_v40  ;;  %v566_v33 = vmul.f32 3.8918573e-05, %v1401_v17  ;;  %v1511_v54 = vadd.f32 0.05243302, %v599_v43 }
 0x1db   :  { %v1082_v29 = vpop.eup %1081  ;;  %v639_v55 = vmul.f32 %v638_v47, %v1446_v9  ;;  %vm461_vm1 = vweird.f32 %v1482_v27  ;;  %v646_v34 = vmul.f32 3.8918573e-05, %v1446_v9  ;;  %v465_v59 = vand.u32 2147483647, %v1482_v27 }
 0x1dc   :  { %v457_v56 = vmul.f32 %v1082_v29, %v1482_v27  ;;  %v493_v61 = vadd.f32 0.4994258, %v492_v52  ;;  %v531_v24 = vadd.f32 0.112945676, %v530_v12  ;;  %v467_v62 = vand.u32 2147483648, %v1482_v27 }
 0x1dd   :  { %v608_v63 = vmul.f32 %v607_v53, %v1428_v57  ;;  %v567_v0 = vadd.f32 0.001143296, %v566_v33  ;;  %v647_v1 = vadd.f32 0.001143296, %v646_v34  ;;  %v952_v3 = vclamps-f32 %v390_v51, 1.0 }
 0x1de   :  { %v1084_v2 = vpop.eup %1083  ;;  %v458_v5 = vsub.f32 1.0, %v457_v56  ;;  %v494_v13 = vmul.f32 %v493_v61, %v1374_v45  ;;  %v532_v18 = vmul.f32 %v531_v24, %v1399_v8  ;;  %vm462_vm2 = vweird.f32 %v1082_v29 }
 0x1df   :  { %v417_v25 = vmul.f32 %v1084_v2, %v1489_v36  ;;  %v609_v26 = vadd.f32 0.014752088, %v608_v63  ;;  %v568_v60 = vmul.f32 %v567_v0, %v1401_v17  ;;  %v648_v23 = vmul.f32 %v647_v1, %v1446_v9  ;;  %vm463_vm4 = vmor %vm461_vm1, %vm462_vm2 }
 0x1e0   :  { %v459_v30 = vmul.f32 %v1082_v29, %v458_v5  ;;  %v1524_v44 = vadd.f32 1.0, %v494_v13  ;;  %v533_v32 = vadd.f32 0.4994258, %v532_v18  ;;  %vm1527_vm3 = vcmp.eq.f32.partialorder %v465_v59, 8.507059e+37 }
 0x1e1   :  { %v418_v6 = vsub.f32 1.0, %v417_v25  ;;  %v610_v45 = vmul.f32 %v609_v26, %v1428_v57  ;;  %v569_v37 = vadd.f32 0.014752088, %v568_v60  ;;  %v468_v7 = vor.u32 1.1754944e-38, %v467_v62 }
 0x1e2   :  { %v460_v19 = vadd.f32 %v1082_v29, %v459_v30  ;;  %v427_v39 = vand.u32 2147483648, %v1489_v36  ;;  %1085 = vrcp.f32 %v1524_v44  ;;  %vm422_vm5 = vweird.f32 %v1084_v2 }
 0x1e3   :  { %v419_v40 = vmul.f32 %v1084_v2, %v418_v6  ;;  %v534_v43 = vmul.f32 %v533_v32, %v1399_v8  ;;  %v611_v47 = vadd.f32 0.112945676, %v610_v45  ;;  %v425_v28 = vand.u32 2147483647, %v1489_v36 }
 0x1e4   :  { %v464_v41 = vsel %vm463_vm4, %v1082_v29, %v460_v19  ;;  %v570_v51 = vmul.f32 %v569_v37, %v1401_v17  ;;  %v649_v52 = vadd.f32 0.014752088, %v648_v23  ;;  %vm421_vm6 = vweird.f32 %v1489_v36 }
 0x1e5   :  { %v469_v12 = vsel %vm1527_vm3, %v468_v7, %v464_v41  ;;  %v420_v53 = vadd.f32 %v1084_v2, %v419_v40  ;;  %v1543_v33 = vadd.f32 1.0, %v534_v43  ;;  %v673_v34 = vadd.f32 1.0, %v952_v3  ;;  %vm423_vm7 = vmor %vm421_vm6, %vm422_vm5 }
 0x1e6   :  { %v470_v27 = vmul.f32 %v469_v12, %v445_v20  ;;  %v612_v8 = vmul.f32 %v611_v47, %v1428_v57  ;;  %v571_v56 = vadd.f32 0.112945676, %v570_v51  ;;  %v428_v59 = vor.u32 1.1754944e-38, %v427_v39 }
 0x1e7   :  { %v424_v29 = vsel %vm423_vm7, %v1084_v2, %v420_v53  ;;  %1087 = vrcp.f32 %v1543_v33  ;;  %v650_v61 = vmul.f32 %v649_v52, %v1446_v9  ;;  %v562_v62 = vadd.f32 0.18741608, %v561_v46 }
 0x1e8   :  { %v1086_v24 = vpop.eup %1085  ;;  %v954_v63 = vclamps-f32 %v470_v27, 1.0  ;;  %vm426_vm8 = vcmp.eq.f32.partialorder %v425_v28, 8.507059e+37  ;;  %v613_v0 = vadd.f32 0.4994258, %v612_v8  ;;  %v524_v36 = vadd.f32 1.1283791, %v1505_v15 }
 0x1e9   :  { %v640_v1 = vadd.f32 0.05243302, %v639_v55  ;;  %v429_v20 = vsel %vm426_vm8, %v428_v59, %v424_v29  ;;  %v497_v3 = vmul.f32 %v1086_v24, %v1524_v44  ;;  %v601_v5 = vmul.f32 %v1511_v54, %v1428_v57 }
 0x1ea   :  { %v675_v2 = vadd.f32 1.0, %v954_v63  ;;  %v614_v13 = vmul.f32 %v613_v0, %v1428_v57  ;;  %v572_v18 = vmul.f32 %v571_v56, %v1401_v17  ;;  %v681_v25 = vmul.f32 %v673_v34, %v1443_v4 }
 0x1eb   :  { %v498_v46 = vsub.f32 1.0, %v497_v3  ;;  %v507_v26 = vand.u32 2147483648, %v1524_v44  ;;  %v651_v60 = vadd.f32 0.112945676, %v650_v61  ;;  %v430_v55 = vmul.f32 %v429_v20, %v1494_v50 }
 0x1ec   :  { %v683_v15 = vmul.f32 %v675_v2, %v1453_v31  ;;  %v1558_v30 = vadd.f32 1.0, %v614_v13  ;;  %v573_v32 = vadd.f32 0.4994258, %v572_v18  ;;  %vm502_vm9 = vweird.f32 %v1086_v24 }
 0x1ed   :  { %v1088_v23 = vpop.eup %1087  ;;  %v499_v54 = vmul.f32 %v1086_v24, %v498_v46  ;;  %v505_v35 = vand.u32 2147483647, %v1524_v44  ;;  %v652_v6 = vmul.f32 %v651_v60, %v1446_v9  ;;  %v641_v4 = vmul.f32 %v640_v1, %v1446_v9 }
 0x1ee   :  { %v689_v45 = vpack.c.bf16 %v683_v15, %v681_v25  ;;  %v537_v37 = vmul.f32 %v1088_v23, %v1543_v33  ;;  %1089 = vrcp.f32 %v1558_v30  ;;  %v602_v31 = vadd.f32 0.18741608, %v601_v5 }
 0x1ef   :  { %v500_v19 = vadd.f32 %v1086_v24, %v499_v54  ;;  %vm501_vm10 = vweird.f32 %v1524_v44  ;;  %v508_v50 = vor.u32 1.1754944e-38, %v507_v26  ;;  %v953_v7 = vclamps-f32 %v430_v55, 1.0 }
 0x1f0   :  { %833 = vmatmul.bf16.vlgmr.msra.gmra.mxu2 %v689_v45  ;;  %vm503_vm11 = vmor %vm501_vm10, %vm502_vm9  ;;  %v538_v39 = vsub.f32 1.0, %v537_v37  ;;  %v574_v40 = vmul.f32 %v573_v32, %v1401_v17  ;;  %v653_v43 = vadd.f32 0.4994258, %v652_v6  ;;  %vm506_vm12 = vcmp.eq.f32.partialorder %v505_v35, 8.507059e+37 }
 0x1f1   :  { %v504_v47 = vsel %vm503_vm11, %v1086_v24, %v500_v19  ;;  %v545_v41 = vand.u32 2147483647, %v1543_v33  ;;  %v547_v28 = vand.u32 2147483648, %v1543_v33  ;;  %vm542_vm13 = vweird.f32 %v1088_v23 }
 0x1f2   :  { %v509_v51 = vsel %vm506_vm12, %v508_v50, %v504_v47  ;;  %v539_v52 = vmul.f32 %v1088_v23, %v538_v39  ;;  %v1569_v12 = vadd.f32 1.0, %v574_v40  ;;  %v563_v44 = vmul.f32 %v562_v62, %v1401_v17 }
 0x1f3   :  { %v603_v53 = vmul.f32 %v602_v31, %v1428_v57  ;;  %v510_v27 = vmul.f32 %v509_v51, %v1502_v11  ;;  %v654_v34 = vmul.f32 %v653_v43, %v1446_v9  ;;  %v674_v56 = vadd.f32 1.0, %v953_v7 }
 0x1f4   :  { %v1090_v8 = vpop.eup %1089  ;;  %v540_v29 = vadd.f32 %v1088_v23, %v539_v52  ;;  %vm541_vm14 = vweird.f32 %v1543_v33  ;;  %1091 = vrcp.f32 %v1569_v12  ;;  %v525_v59 = vmul.f32 %v524_v36, %v1386_v16 }
 0x1f5   :  { %v955_v61 = vclamps-f32 %v510_v27, 1.0  ;;  %vm543_vm15 = vmor %vm541_vm14, %vm542_vm13  ;;  %v548_v24 = vor.u32 1.1754944e-38, %v547_v28  ;;  %v617_v17 = vmul.f32 %v1090_v8, %v1558_v30  ;;  %v642_v62 = vadd.f32 0.18741608, %v641_v4 }
 0x1f6   :  { %v544_v57 = vsel %vm543_vm15, %v1088_v23, %v540_v29  ;;  %vm546_vm0 = vcmp.eq.f32.partialorder %v545_v41, 8.507059e+37  ;;  %v1579_v11 = vadd.f32 1.0, %v654_v34  ;;  %v604_v63 = vadd.f32 1.1283791, %v603_v53 }
 0x1f7   :  { %v676_v0 = vadd.f32 1.0, %v955_v61  ;;  %v549_v1 = vsel %vm546_vm0, %v548_v24, %v544_v57  ;;  %v618_v20 = vsub.f32 1.0, %v617_v17  ;;  %v682_v33 = vmul.f32 %v674_v56, %v1450_v14 }
 0x1f8   :  { %v625_v3 = vand.u32 2147483647, %v1558_v30  ;;  %v627_v16 = vand.u32 2147483648, %v1558_v30  ;;  %1093 = vrcp.f32 %v1579_v11  ;;  %v550_v5 = vmul.f32 %v549_v1, %v525_v59 }
 0x1f9   :  { %v684_v36 = vmul.f32 %v676_v0, %v1498_v42  ;;  %v619_v2 = vmul.f32 %v1090_v8, %v618_v20  ;;  %vm622_vm1 = vweird.f32 %v1090_v8  ;;  %vm621_vm2 = vweird.f32 %v1558_v30  ;;  %v1068_v0 = vld [vmem:[%s1618_s6] ss:$0 sm:$0xff] }
 0x1fa   :  { %v1092_v13 = vpop.eup %1091  ;;  %v564_v26 = vadd.f32 1.1283791, %v563_v44  ;;  %v605_v14 = vmul.f32 %v604_v63, %v1418_v38  ;;  %v643_v60 = vmul.f32 %v642_v62, %v1446_v9  ;;  %vm623_vm3 = vmor %vm621_vm2, %vm622_vm1  ;;  %v628_v15 = vor.u32 1.1754944e-38, %v627_v16 }
 0x1fb   :  { %v690_v18 = vpack.c.bf16 %v684_v36, %v682_v33  ;;  %v620_v25 = vadd.f32 %v1090_v8, %v619_v2  ;;  %v577_v46 = vmul.f32 %v1092_v13, %v1569_v12  ;;  %v956_v55 = vclamps-f32 %v550_v5, 1.0 }
 0x1fc   :  { %vm626_vm4 = vcmp.eq.f32.partialorder %v625_v3, 8.507059e+37  ;;  %v341_v54 = vmul.f32 0.5, %v1377_v48  ;;  %v585_v30 = vand.u32 2147483647, %v1569_v12  ;;  %v587_v6 = vand.u32 2147483648, %v1569_v12 }
 0x1fd   :  { %852 = vmatmul.bf16.vlgmr.msra.gmra.mxu3 %v690_v18  ;;  %v624_v42 = vsel %vm623_vm3, %v1090_v8, %v620_v25  ;;  %v578_v32 = vsub.f32 1.0, %v577_v46  ;;  %vm582_vm5 = vweird.f32 %v1092_v13  ;;  %v565_v9 = vmul.f32 %v564_v26, %v1390_v58 }
 0x1fe   :  { %v1094_v23 = vpop.eup %1093  ;;  %v629_v35 = vsel %vm626_vm4, %v628_v15, %v624_v42  ;;  %v343_v37 = vmul.f32 0.5, %v1405_v21  ;;  %v644_v31 = vadd.f32 1.1283791, %v643_v60  ;;  %vm581_vm6 = vweird.f32 %v1569_v12 }
 0x1ff   :  { %v630_v4 = vmul.f32 %v629_v35, %v605_v14  ;;  %v579_v45 = vmul.f32 %v1092_v13, %v578_v32  ;;  %v657_v38 = vmul.f32 %v1094_v23, %v1579_v11  ;;  %v677_v50 = vadd.f32 1.0, %v956_v55  ;;  %vm583_vm7 = vmor %vm581_vm6, %vm582_vm5 }
 0x200   :  { %vm586_vm8 = vcmp.eq.f32.partialorder %v585_v30, 8.507059e+37  ;;  %v588_v39 = vor.u32 1.1754944e-38, %v587_v6  ;;  %v665_v40 = vand.u32 2147483647, %v1579_v11  ;;  %v667_v43 = vand.u32 2147483648, %v1579_v11 }
 0x201   :  { %v958_v19 = vclamps-f32 %v630_v4, 1.0  ;;  %v580_v48 = vadd.f32 %v1092_v13, %v579_v45  ;;  %v658_v7 = vsub.f32 1.0, %v657_v38  ;;  %vm662_vm9 = vweird.f32 %v1094_v23 }
 0x202   :  { %vm661_vm10 = vweird.f32 %v1579_v11  ;;  %v685_v21 = vmul.f32 %v677_v50, %v341_v54  ;;  %v645_v44 = vmul.f32 %v644_v31, %v1422_v10  ;;  %v668_v53 = vor.u32 1.1754944e-38, %v667_v43 }
 0x203   :  { %v679_v47 = vadd.f32 1.0, %v958_v19  ;;  %v584_v41 = vsel %vm583_vm7, %v1092_v13, %v580_v48  ;;  %v659_v28 = vmul.f32 %v1094_v23, %v658_v7  ;;  %vm663_vm11 = vmor %vm661_vm10, %vm662_vm9  ;;  %vm666_vm12 = vcmp.eq.f32.partialorder %v665_v40, 8.507059e+37 }
 0x204   :  { %v589_v58 = vsel %vm586_vm8, %v588_v39, %v584_v41  ;;  %v342_v24 = vmul.f32 0.5, %v1380_v49  ;;  %v344_v17 = vmul.f32 0.5, %v1408_v22 }
 0x205   :  { %v687_v51 = vmul.f32 %v679_v47, %v343_v37  ;;  %v590_v52 = vmul.f32 %v589_v58, %v565_v9  ;;  %v660_v12 = vadd.f32 %v1094_v23, %v659_v28 }
 0x207   :  { %v691_v27 = vpack.c.bf16 %v687_v51, %v685_v21  ;;  %v957_v34 = vclamps-f32 %v590_v52, 1.0  ;;  %v664_v8 = vsel %vm663_vm11, %v1094_v23, %v660_v12 }
 0x208   :  { %v669_v56 = vsel %vm666_vm12, %v668_v53, %v664_v8 }
 0x209   :  { %838 = vmatmul.bf16.gmra.mxu2 %v691_v27  ;;  %v670_v29 = vmul.f32 %v669_v56, %v645_v44  ;;  %v678_v61 = vadd.f32 1.0, %v957_v34 }
 0x20b   :  { %v959_v59 = vclamps-f32 %v670_v29, 1.0  ;;  %v686_v57 = vmul.f32 %v678_v61, %v342_v24 }
 0x20d   :  { %v680_v62 = vadd.f32 1.0, %v959_v59 }
 0x20f   :  { %v688_v11 = vmul.f32 %v680_v62, %v344_v17 }
 0x211   :  { %v692_v63 = vpack.c.bf16 %v688_v11, %v686_v57 }
 0x213   :  { %857 = vmatmul.bf16.gmra.mxu3 %v692_v63 }
 0x273   :  { %v834_v10 = vpop.f32.mrf.mxu2 }
 0x274   :  { %v835_v1 = vadd.f32 %v1068_v0, %v834_v10 }
 0x27b   :  { %v836_v3 = vpop.f32.mrf.mxu2 }
 0x27c   :  { %v837_v16 = vadd.f32 %v1068_v0, %v836_v3 }
 0x280   :  { %v853_v20 = vpop.f32.mrf.mxu3 }
 0x281   :  { %v854_v33 = vadd.f32 %v853_v20, %v835_v1 }
 0x283   :  { %863 = vst [vmem:[#allocation10] sm:$0xff] %v854_v33 }
 0x288   :  { %v855_v36 = vpop.f32.mrf.mxu3 }
 0x289   :  { %v856_v49 = vadd.f32 %v855_v36, %v837_v16 }
 0x28b   :  { %864 = vst [vmem:[#allocation10 + $0x8] sm:$0xff] %v856_v49 }
 0x28c   :  { %v839_v22 = vpop.f32.mrf.mxu2 }
 0x28d   :  { %v840_v5 = vadd.f32 %v1068_v0, %v839_v22 }
 0x294   :  { %v841_v18 = vpop.f32.mrf.mxu2 }
 0x295   :  { %v842_v25 = vadd.f32 %v1068_v0, %v841_v18 }
 0x296   :  { %v858_v2 = vpop.f32.mrf.mxu3 }
 0x297   :  { %v859_v13 = vadd.f32 %v858_v2, %v840_v5 }
 0x299   :  { %865 = vst [vmem:[#allocation10 + $0x10] sm:$0xff] %v859_v13 }
 0x29e   :  { %v860_v46 = vpop.f32.mrf.mxu3 }
 0x29f   :  { %v861_v26 = vadd.f32 %v860_v46, %v842_v25 }
 0x2a1   :  { %866 = vst [vmem:[#allocation10 + $0x18] sm:$0xff] %v861_v26 }
 0x2a2   :  { %879 = dma.vmem_to_hbm [thread:$0]  %s872_s26, 512, %s874_s28, [#allocation4], %s1225_s11, %s1225_s11, %s1226_s12  }
 0x2a3   :  { %1221 = dma.done.wait [#allocation4], 512  }
 0x2a4   :  { %1222 = vsyncadd [#allocation4], 4294966784 }
 0x2a5   :  { %884 = vsyncpa [#allocation3], 1 }
 0x2a6   :  { %885 = vsyncpa [#allocation6], 1 }
 0x2a7   :  { %886 = vsyncpa [#allocation9], 1 }
 0x2a8   :  { %887 = vsyncpa [#allocation4], 1 }

</bundles_post_ra>
